<compile_context>
chip_gen: v7x
topology: tpu7x:2x2x1
jax: 0.10.0
libtpu: 0.0.40
codegen_flags: <defaults>
</compile_context>

<pallas_src>
import functools

import jax
import jax.numpy as jnp
from jax.experimental import pallas as pl
from jax.experimental.pallas import tpu as pltpu


# ----------------------------------------------------------------------------
# Fused attention kernel: one grid step = `bt` windows, all heads.
# ----------------------------------------------------------------------------
def _attention_body(x_ref, wqkv_ref, bqkv_ref, wproj_ref, bproj_ref,
                    bias_ref, mask_ref, o_ref, *, num_heads, head_dim):
    bt, N, C = x_ref.shape
    Dh = head_dim
    f32 = jnp.float32
    bf16 = jnp.bfloat16

    # qkv projection on the flattened (bt*N, C) slab; scale already folded
    # into the q columns of wqkv.  bf16 MXU operands, f32 accumulation.
    x = x_ref[...].reshape(bt * N, C)                                 # bf16
    qkv = jnp.dot(x, wqkv_ref[...], preferred_element_type=f32)
    qkv = qkv + bqkv_ref[...]                                         # (bt*N, 3C) f32

    m = mask_ref[...].astype(f32) if mask_ref is not None else None   # (bt, N, N)

    acc = jnp.zeros((bt * N, C), f32)
    for h in range(num_heads):
        q = qkv[:, h * Dh:(h + 1) * Dh].reshape(bt, N, Dh)
        k = qkv[:, C + h * Dh:C + (h + 1) * Dh].reshape(bt, N, Dh)
        v = qkv[:, 2 * C + h * Dh:2 * C + (h + 1) * Dh].reshape(bt, N, Dh)

        # scores batched over the window axis (sublane batch), f32 accum
        s = jnp.einsum("bqd,bkd->bqk", q.astype(bf16), k.astype(bf16),
                       preferred_element_type=f32)                     # (bt, N, N)
        s = s + bias_ref[h].astype(f32)
        if m is not None:
            s = s + m

        # softmax stats stay in f32 (VPU/EUP)
        s = s - jnp.max(s, axis=-1, keepdims=True)
        p = jnp.exp(s)
        denom = jnp.sum(p, axis=-1, keepdims=True)                     # (bt, N, 1)

        o_h = jnp.einsum("bqk,bkd->bqd", p.astype(bf16), v.astype(bf16),
                         preferred_element_type=f32)                   # (bt, N, Dh)
        # normalize after p@v (N*Dh mults instead of N*N) via EUP reciprocal
        o_h = o_h * pl.reciprocal(denom, approx=True)

        # accumulate the output projection per head (no lane-offset concat);
        # wproj row slice is sublane-aligned (Dh multiple of 8).
        acc = acc + jnp.dot(o_h.reshape(bt * N, Dh).astype(bf16),
                            wproj_ref[h * Dh:(h + 1) * Dh, :],
                            preferred_element_type=f32)

    out = acc + bproj_ref[...]
    o_ref[...] = out.reshape(bt, N, C).astype(o_ref.dtype)


def _fused_attn_kernel(x_ref, wqkv_ref, bqkv_ref, wproj_ref, bproj_ref,
                       bias_ref, o_ref, *, num_heads, head_dim):
    _attention_body(x_ref, wqkv_ref, bqkv_ref, wproj_ref, bproj_ref,
                    bias_ref, None, o_ref,
                    num_heads=num_heads, head_dim=head_dim)


def _fused_attn_mask_kernel(x_ref, wqkv_ref, bqkv_ref, wproj_ref, bproj_ref,
                            bias_ref, mask_ref, o_ref, *, num_heads, head_dim):
    _attention_body(x_ref, wqkv_ref, bqkv_ref, wproj_ref, bproj_ref,
                    bias_ref, mask_ref, o_ref,
                    num_heads=num_heads, head_dim=head_dim)


# ----------------------------------------------------------------------------
# DynamicPosBias (tiny MLP over (2H-1)*(2W-1) offsets) — plain JAX glue.
# ----------------------------------------------------------------------------
def _layernorm(x, g, b, eps=1e-5):
    mu = jnp.mean(x, axis=-1, keepdims=True)
    var = jnp.mean((x - mu) ** 2, axis=-1, keepdims=True)
    return (x - mu) / jnp.sqrt(var + eps) * g + b


def dynamic_pos_bias(p, H, W, num_heads):
    """Relative position bias of shape (num_heads, N, N), N = H*W."""
    ph = jnp.arange(1 - H, H)
    pw = jnp.arange(1 - W, W)
    biases = jnp.stack(jnp.meshgrid(ph, pw, indexing="ij"))           # (2,2H-1,2W-1)
    biases = biases.reshape(2, -1).T.astype(jnp.float32)              # (M, 2)

    ch = jnp.arange(H)
    cw = jnp.arange(W)
    coords = jnp.stack(jnp.meshgrid(ch, cw, indexing="ij")).reshape(2, -1)
    rel = coords[:, :, None] - coords[:, None, :]                     # (2, N, N)
    rel = rel.transpose(1, 2, 0)                                      # (N, N, 2)
    rel = rel.at[:, :, 0].add(H - 1)
    rel = rel.at[:, :, 1].add(W - 1)
    rel = rel.at[:, :, 0].multiply(2 * W - 1)
    rel_idx = rel.sum(-1)                                             # (N, N)

    x = biases @ p["pos_proj_w"].T + p["pos_proj_b"]
    x = _layernorm(x, p["ln1_g"], p["ln1_b"])
    x = jax.nn.relu(x) @ p["pos1_w"].T + p["pos1_b"]
    x = _layernorm(x, p["ln2_g"], p["ln2_b"])
    x = jax.nn.relu(x) @ p["pos2_w"].T + p["pos2_b"]
    x = _layernorm(x, p["ln3_g"], p["ln3_b"])
    pos = jax.nn.relu(x) @ p["pos3_w"].T + p["pos3_b"]                # (M, nh)

    N = H * W
    rpb = pos[rel_idx.reshape(-1)].reshape(N, N, num_heads)
    return rpb.transpose(2, 0, 1)                                     # (nh, N, N)


# ----------------------------------------------------------------------------
# Full Attention forward: one fused Pallas call, `bt` windows per grid step.
# ----------------------------------------------------------------------------
def attention_forward(params, x, H, W, num_heads, mask=None, block_b=8):
    B_, N, C = x.shape
    assert H * W == N
    head_dim = C // num_heads
    scale = head_dim ** (-0.5)
    compute_dtype = jnp.bfloat16

    # --- choose window block; always keep >= 2 grid steps when B_ >= 2 so the
    #     "parallel" batch axis can shard across v7x's two TensorCores.
    bt = max(1, min(block_b, B_ // 2)) if B_ >= 2 else 1
    num_steps = -(-B_ // bt)
    B_pad = num_steps * bt

    # --- weight prep (trace-time): fold qk scale into q columns, cast to bf16.
    wqkv = params["qkv_w"].T.astype(jnp.float32)                      # (C, 3C)
    bqkv = params["qkv_b"].astype(jnp.float32)
    col_scale = jnp.concatenate([jnp.full((C,), scale, jnp.float32),
                                 jnp.ones((2 * C,), jnp.float32)])
    wqkv = (wqkv * col_scale[None, :]).astype(compute_dtype)
    bqkv = (bqkv * col_scale).reshape(1, 3 * C)                       # f32
    wproj = params["proj_w"].T.astype(compute_dtype)                  # (C, C)
    bproj = params["proj_b"].reshape(1, C).astype(jnp.float32)

    # Dynamic relative position bias, shared across windows (resident, bf16).
    bias = dynamic_pos_bias(params, H, W, num_heads).astype(compute_dtype)

    x_in = x.astype(compute_dtype)
    if B_pad != B_:
        x_in = jnp.pad(x_in, ((0, B_pad - B_), (0, 0), (0, 0)))

    in_specs = [
        pl.BlockSpec((bt, N, C), lambda b: (b, 0, 0)),                # x block
        pl.BlockSpec((C, 3 * C), lambda b: (0, 0)),                   # wqkv (resident)
        pl.BlockSpec((1, 3 * C), lambda b: (0, 0)),                   # bqkv
        pl.BlockSpec((C, C), lambda b: (0, 0)),                       # wproj
        pl.BlockSpec((1, C), lambda b: (0, 0)),                       # bproj
        pl.BlockSpec((num_heads, N, N), lambda b: (0, 0, 0)),         # pos bias
    ]
    args = [x_in, wqkv, bqkv, wproj, bproj, bias]

    if mask is not None:
        nP = int(mask.shape[0])
        # Pre-gather the mask per window (b % nP) so a window block may span
        # several nP groups; streamed as bf16, cast to f32 inside the kernel.
        mask_pw = mask.astype(compute_dtype)[jnp.arange(B_pad) % nP]  # (B_pad, N, N)
        in_specs.append(pl.BlockSpec((bt, N, N), lambda b: (b, 0, 0)))
        args.append(mask_pw)
        kern = functools.partial(_fused_attn_mask_kernel,
                                 num_heads=num_heads, head_dim=head_dim)
    else:
        kern = functools.partial(_fused_attn_kernel,
                                 num_heads=num_heads, head_dim=head_dim)

    # --- explicit VMEM budget (double-buffered blocks + resident weights/bias
    #     + in-kernel f32 temporaries), with headroom; capped at v7x physical.
    bf, f4 = 2, 4
    est = 2 * bt * N * C * bf                          # x blocks
    est += 2 * bt * N * C * x.dtype.itemsize           # out blocks
    est += 2 * num_heads * N * N * bf                  # bias
    if mask is not None:
        est += 2 * bt * N * N * bf                     # mask blocks
    est += 2 * (C * 3 * C + C * C) * bf + 2 * 4 * C * f4
    est += bt * N * 3 * C * f4 + 2 * bt * N * N * f4 + 2 * bt * N * C * f4
    vmem_limit = int(min(64 * 2 ** 20, max(16 * 2 ** 20, 2 * est)))

    out = pl.pallas_call(
        kern,
        out_shape=jax.ShapeDtypeStruct((B_pad, N, C), x.dtype),
        grid=(num_steps,),
        in_specs=in_specs,
        out_specs=pl.BlockSpec((bt, N, C), lambda b: (b, 0, 0)),
        compiler_params=pltpu.CompilerParams(
            dimension_semantics=("parallel",),
            vmem_limit_bytes=vmem_limit),
    )(*args)
    return out[:B_] if B_pad != B_ else out


# ----------------------------------------------------------------------------
# Deterministic parameter init (shapes per nn.Module __init__)
# ----------------------------------------------------------------------------
def init_params(key, dim, num_heads):
    pos_inner = dim // 4                 # DynamicPosBias(dim // 4, num_heads)
    pos_dim = pos_inner // 4
    ks = jax.random.split(key, 10)
    n = lambda k, shp: (0.02 * jax.random.normal(k, shp)).astype(jnp.float32)
    return {
        "qkv_w": n(ks[0], (3 * dim, dim)),
        "qkv_b": n(ks[1], (3 * dim,)),
        "proj_w": n(ks[2], (dim, dim)),
        "proj_b": n(ks[3], (dim,)),
        # DynamicPosBias
        "pos_proj_w": n(ks[4], (pos_dim, 2)),
        "pos_proj_b": jnp.zeros((pos_dim,), jnp.float32),
        "ln1_g": jnp.ones((pos_dim,), jnp.float32),
        "ln1_b": jnp.zeros((pos_dim,), jnp.float32),
        "pos1_w": n(ks[5], (pos_dim, pos_dim)),
        "pos1_b": jnp.zeros((pos_dim,), jnp.float32),
        "ln2_g": jnp.ones((pos_dim,), jnp.float32),
        "ln2_b": jnp.zeros((pos_dim,), jnp.float32),
        "pos2_w": n(ks[6], (pos_dim, pos_dim)),
        "pos2_b": jnp.zeros((pos_dim,), jnp.float32),
        "ln3_g": jnp.ones((pos_dim,), jnp.float32),
        "ln3_b": jnp.zeros((pos_dim,), jnp.float32),
        "pos3_w": n(ks[7], (num_heads, pos_dim)),
        "pos3_b": jnp.zeros((num_heads,), jnp.float32),
    }


# ----------------------------------------------------------------------------
# Pure-JAX reference (f32, mirrors the PyTorch forward) for correctness.
# ----------------------------------------------------------------------------
def reference_forward(params, x, H, W, num_heads, mask=None):
    B_, N, C = x.shape
    head_dim = C // num_heads
    scale = head_dim ** (-0.5)
    qkv = x @ params["qkv_w"].T + params["qkv_b"]
    qkv = qkv.reshape(B_, N, 3, num_heads, head_dim).transpose(2, 0, 3, 1, 4)
    q, k, v = qkv[0] * scale, qkv[1], qkv[2]
    attn = jnp.einsum("bhnd,bhmd->bhnm", q, k)
    attn = attn + dynamic_pos_bias(params, H, W, num_heads)[None]
    if mask is not None:
        nP = mask.shape[0]
        attn = attn.reshape(B_ // nP, nP, num_heads, N, N) + mask[None, :, None]
        attn = attn.reshape(B_, num_heads, N, N)
    attn = jax.nn.softmax(attn, axis=-1)
    out = jnp.einsum("bhnm,bhmd->bhnd", attn, v)
    out = out.transpose(0, 2, 1, 3).reshape(B_, N, C)
    return out @ params["proj_w"].T + params["proj_b"]


if __name__ == "__main__":
    # small shapes consistent with the module: dim=32, 2 heads, 8x8 group
    dim, num_heads = 32, 2
    H, W = 8, 8
    N = H * W

    key = jax.random.PRNGKey(0)
    pkey, xkey1, xkey2 = jax.random.split(key, 3)
    params = init_params(pkey, dim, num_heads)

    # --- unmasked path; B_ not divisible by the window block (exercises
    #     padding) and produces >= 2 grid steps.
    B1 = 5
    x1 = jax.random.normal(xkey1, (B1, N, dim), dtype=jnp.float32)
    out1 = jax.block_until_ready(attention_forward(params, x1, H, W, num_heads))
    ref1 = reference_forward(params, x1, H, W, num_heads)
    assert out1.shape == (B1, N, dim)
    assert jnp.allclose(out1, ref1, rtol=3e-2, atol=5e-3), \
        float(jnp.max(jnp.abs(out1 - ref1)))

    # --- masked path (nP window groups, mimicking padded windows) ---
    NEG_INF = -1000000.0
    B2, nP = 4, 2
    x2 = jax.random.normal(xkey2, (B2, N, dim), dtype=jnp.float32)
    mask = jnp.zeros((nP, N, N), jnp.float32)
    mask = mask.at[1, :, -W:].set(NEG_INF)
    out2 = jax.block_until_ready(
        attention_forward(params, x2, H, W, num_heads, mask=mask))
    ref2 = reference_forward(params, x2, H, W, num_heads, mask=mask)
    assert jnp.allclose(out2, ref2, rtol=3e-2, atol=5e-3), \
        float(jnp.max(jnp.abs(out2 - ref2)))

    print("KERNEL_OK")
</pallas_src>

<mosaic_0001>
module attributes {stable_mosaic.version = 11 : i64} {
  func.func @_fused_attn_kernel(%arg0: i32, %arg1: memref<2x64x32xbf16, #tpu.memory_space<vmem>>, %arg2: memref<32x96xbf16, #tpu.memory_space<vmem>>, %arg3: memref<1x96xf32, #tpu.memory_space<vmem>>, %arg4: memref<32x32xbf16, #tpu.memory_space<vmem>>, %arg5: memref<1x32xf32, #tpu.memory_space<vmem>>, %arg6: memref<2x64x64xbf16, #tpu.memory_space<vmem>>, %arg7: memref<2x64x32xf32, #tpu.memory_space<vmem>>) attributes {dimension_semantics = [#tpu.dimension_semantics<parallel>], iteration_bounds = array<i64: 3>, scalar_prefetch = 0 : i64, scratch_operands = 0 : i64, tpu.core_type = #tpu.core_type<tc>, window_params = [{transform_indices = @transform_0, window_bounds = array<i64: 2, 64, 32>}, {pipeline_mode = #tpu.pipeline_mode<synchronous>, transform_indices = @transform_1, window_bounds = array<i64: 32, 96>}, {pipeline_mode = #tpu.pipeline_mode<synchronous>, transform_indices = @transform_2, window_bounds = array<i64: 1, 96>}, {pipeline_mode = #tpu.pipeline_mode<synchronous>, transform_indices = @transform_3, window_bounds = array<i64: 32, 32>}, {pipeline_mode = #tpu.pipeline_mode<synchronous>, transform_indices = @transform_4, window_bounds = array<i64: 1, 32>}, {pipeline_mode = #tpu.pipeline_mode<synchronous>, transform_indices = @transform_5, window_bounds = array<i64: 2, 64, 64>}, {transform_indices = @transform_6, window_bounds = array<i64: 2, 64, 32>}]} {
    %c0 = arith.constant 0 : index
    %c0_0 = arith.constant 0 : index
    %c0_1 = arith.constant 0 : index
    %0 = vector.load %arg1[%c0, %c0_0, %c0_1] : memref<2x64x32xbf16, #tpu.memory_space<vmem>>, vector<2x64x32xbf16>
    %1 = vector.shape_cast %0 : vector<2x64x32xbf16> to vector<128x32xbf16>
    %c0_2 = arith.constant 0 : index
    %c0_3 = arith.constant 0 : index
    %2 = vector.load %arg2[%c0_2, %c0_3] : memref<32x96xbf16, #tpu.memory_space<vmem>>, vector<32x96xbf16>
    %cst = arith.constant dense<0.000000e+00> : vector<128x96xf32>
    %3 = tpu.matmul %1, %2, %cst {dimension_numbers = #tpu.dot_dimension_numbers<[1], [0], [0], [1], [0, 0, 1, 1], [], []>} : vector<128x32xbf16>, vector<32x96xbf16>, vector<128x96xf32> -> vector<128x96xf32>
    %c0_4 = arith.constant 0 : index
    %c0_5 = arith.constant 0 : index
    %4 = vector.load %arg3[%c0_4, %c0_5] : memref<1x96xf32, #tpu.memory_space<vmem>>, vector<1x96xf32>
    %5 = vector.broadcast %4 : vector<1x96xf32> to vector<128x96xf32>
    %6 = arith.addf %3, %5 : vector<128x96xf32>
    %cst_6 = arith.constant 0.000000e+00 : f32
    %7 = vector.broadcast %cst_6 : f32 to vector<128x32xf32>
    %8 = vector.extract_strided_slice %6 {offsets = [0, 0], sizes = [128, 16], strides = [1, 1]} : vector<128x96xf32> to vector<128x16xf32>
    %9 = vector.shape_cast %8 : vector<128x16xf32> to vector<2x64x16xf32>
    %10 = vector.extract_strided_slice %6 {offsets = [0, 32], sizes = [128, 16], strides = [1, 1]} : vector<128x96xf32> to vector<128x16xf32>
    %11 = vector.shape_cast %10 : vector<128x16xf32> to vector<2x64x16xf32>
    %12 = vector.extract_strided_slice %6 {offsets = [0, 64], sizes = [128, 16], strides = [1, 1]} : vector<128x96xf32> to vector<128x16xf32>
    %13 = vector.shape_cast %12 : vector<128x16xf32> to vector<2x64x16xf32>
    %14 = arith.truncf %9 : vector<2x64x16xf32> to vector<2x64x16xbf16>
    %15 = arith.truncf %11 : vector<2x64x16xf32> to vector<2x64x16xbf16>
    "tpu.trace_start"() <{level = 10 : i32, message = "bqd,bkd->bqk"}> : () -> ()
    %cst_7 = arith.constant dense<0.000000e+00> : vector<2x64x64xf32>
    %16 = tpu.matmul %14, %15, %cst_7 {dimension_numbers = #tpu.dot_dimension_numbers<[2], [2], [1], [1], [0, 0, 0, 1, 1, 1], [0], [0]>} : vector<2x64x16xbf16>, vector<2x64x16xbf16>, vector<2x64x64xf32> -> vector<2x64x64xf32>
    "tpu.trace_stop"() : () -> ()
    %c0_8 = arith.constant 0 : index
    %c0_9 = arith.constant 0 : index
    %c0_10 = arith.constant 0 : index
    %17 = vector.load %arg6[%c0_8, %c0_9, %c0_10] : memref<2x64x64xbf16, #tpu.memory_space<vmem>>, vector<1x64x64xbf16>
    %18 = vector.shape_cast %17 : vector<1x64x64xbf16> to vector<64x64xbf16>
    %19 = arith.extf %18 : vector<64x64xbf16> to vector<64x64xf32>
    %20 = vector.shape_cast %19 : vector<64x64xf32> to vector<1x64x64xf32>
    %21 = vector.broadcast %20 : vector<1x64x64xf32> to vector<2x64x64xf32>
    %22 = arith.addf %16, %21 : vector<2x64x64xf32>
    %cst_11 = arith.constant dense<0xFF800000> : vector<2x64xf32>
    %23 = vector.multi_reduction <maximumf>, %22, %cst_11 [2] : vector<2x64x64xf32> to vector<2x64xf32>
    %24 = vector.shape_cast %23 : vector<2x64xf32> to vector<2x64x1xf32>
    %25 = vector.broadcast %24 : vector<2x64x1xf32> to vector<2x64x64xf32>
    %26 = arith.subf %22, %25 : vector<2x64x64xf32>
    %27 = math.exp %26 : vector<2x64x64xf32>
    %cst_12 = arith.constant dense<0.000000e+00> : vector<2x64xf32>
    %28 = vector.multi_reduction <add>, %27, %cst_12 [2] : vector<2x64x64xf32> to vector<2x64xf32>
    %29 = vector.shape_cast %28 : vector<2x64xf32> to vector<2x64x1xf32>
    %30 = arith.truncf %27 : vector<2x64x64xf32> to vector<2x64x64xbf16>
    %31 = arith.truncf %13 : vector<2x64x16xf32> to vector<2x64x16xbf16>
    "tpu.trace_start"() <{level = 10 : i32, message = "bqk,bkd->bqd"}> : () -> ()
    %cst_13 = arith.constant dense<0.000000e+00> : vector<2x64x16xf32>
    %32 = tpu.matmul %30, %31, %cst_13 {dimension_numbers = #tpu.dot_dimension_numbers<[2], [1], [1], [2], [0, 0, 0, 1, 1, 2], [0], [0]>} : vector<2x64x64xbf16>, vector<2x64x16xbf16>, vector<2x64x16xf32> -> vector<2x64x16xf32>
    "tpu.trace_stop"() : () -> ()
    %33 = tpu.reciprocal %29 {approx = true} : vector<2x64x1xf32> -> vector<2x64x1xf32>
    %34 = vector.broadcast %33 : vector<2x64x1xf32> to vector<2x64x16xf32>
    %35 = arith.mulf %32, %34 : vector<2x64x16xf32>
    %36 = vector.shape_cast %35 : vector<2x64x16xf32> to vector<128x16xf32>
    %37 = arith.truncf %36 : vector<128x16xf32> to vector<128x16xbf16>
    %c0_14 = arith.constant 0 : index
    %c0_15 = arith.constant 0 : index
    %38 = vector.load %arg4[%c0_14, %c0_15] : memref<32x32xbf16, #tpu.memory_space<vmem>>, vector<16x32xbf16>
    %cst_16 = arith.constant dense<0.000000e+00> : vector<128x32xf32>
    %39 = tpu.matmul %37, %38, %cst_16 {dimension_numbers = #tpu.dot_dimension_numbers<[1], [0], [0], [1], [0, 0, 1, 1], [], []>} : vector<128x16xbf16>, vector<16x32xbf16>, vector<128x32xf32> -> vector<128x32xf32>
    %40 = arith.addf %7, %39 : vector<128x32xf32>
    %41 = vector.extract_strided_slice %6 {offsets = [0, 16], sizes = [128, 16], strides = [1, 1]} : vector<128x96xf32> to vector<128x16xf32>
    %42 = vector.shape_cast %41 : vector<128x16xf32> to vector<2x64x16xf32>
    %43 = vector.extract_strided_slice %6 {offsets = [0, 48], sizes = [128, 16], strides = [1, 1]} : vector<128x96xf32> to vector<128x16xf32>
    %44 = vector.shape_cast %43 : vector<128x16xf32> to vector<2x64x16xf32>
    %45 = vector.extract_strided_slice %6 {offsets = [0, 80], sizes = [128, 16], strides = [1, 1]} : vector<128x96xf32> to vector<128x16xf32>
    %46 = vector.shape_cast %45 : vector<128x16xf32> to vector<2x64x16xf32>
    %47 = arith.truncf %42 : vector<2x64x16xf32> to vector<2x64x16xbf16>
    %48 = arith.truncf %44 : vector<2x64x16xf32> to vector<2x64x16xbf16>
    "tpu.trace_start"() <{level = 10 : i32, message = "bqd,bkd->bqk"}> : () -> ()
    %cst_17 = arith.constant dense<0.000000e+00> : vector<2x64x64xf32>
    %49 = tpu.matmul %47, %48, %cst_17 {dimension_numbers = #tpu.dot_dimension_numbers<[2], [2], [1], [1], [0, 0, 0, 1, 1, 1], [0], [0]>} : vector<2x64x16xbf16>, vector<2x64x16xbf16>, vector<2x64x64xf32> -> vector<2x64x64xf32>
    "tpu.trace_stop"() : () -> ()
    %c1 = arith.constant 1 : index
    %c0_18 = arith.constant 0 : index
    %c0_19 = arith.constant 0 : index
    %50 = vector.load %arg6[%c1, %c0_18, %c0_19] : memref<2x64x64xbf16, #tpu.memory_space<vmem>>, vector<1x64x64xbf16>
    %51 = vector.shape_cast %50 : vector<1x64x64xbf16> to vector<64x64xbf16>
    %52 = arith.extf %51 : vector<64x64xbf16> to vector<64x64xf32>
    %53 = vector.shape_cast %52 : vector<64x64xf32> to vector<1x64x64xf32>
    %54 = vector.broadcast %53 : vector<1x64x64xf32> to vector<2x64x64xf32>
    %55 = arith.addf %49, %54 : vector<2x64x64xf32>
    %cst_20 = arith.constant dense<0xFF800000> : vector<2x64xf32>
    %56 = vector.multi_reduction <maximumf>, %55, %cst_20 [2] : vector<2x64x64xf32> to vector<2x64xf32>
    %57 = vector.shape_cast %56 : vector<2x64xf32> to vector<2x64x1xf32>
    %58 = vector.broadcast %57 : vector<2x64x1xf32> to vector<2x64x64xf32>
    %59 = arith.subf %55, %58 : vector<2x64x64xf32>
    %60 = math.exp %59 : vector<2x64x64xf32>
    %cst_21 = arith.constant dense<0.000000e+00> : vector<2x64xf32>
    %61 = vector.multi_reduction <add>, %60, %cst_21 [2] : vector<2x64x64xf32> to vector<2x64xf32>
    %62 = vector.shape_cast %61 : vector<2x64xf32> to vector<2x64x1xf32>
    %63 = arith.truncf %60 : vector<2x64x64xf32> to vector<2x64x64xbf16>
    %64 = arith.truncf %46 : vector<2x64x16xf32> to vector<2x64x16xbf16>
    "tpu.trace_start"() <{level = 10 : i32, message = "bqk,bkd->bqd"}> : () -> ()
    %cst_22 = arith.constant dense<0.000000e+00> : vector<2x64x16xf32>
    %65 = tpu.matmul %63, %64, %cst_22 {dimension_numbers = #tpu.dot_dimension_numbers<[2], [1], [1], [2], [0, 0, 0, 1, 1, 2], [0], [0]>} : vector<2x64x64xbf16>, vector<2x64x16xbf16>, vector<2x64x16xf32> -> vector<2x64x16xf32>
    "tpu.trace_stop"() : () -> ()
    %66 = tpu.reciprocal %62 {approx = true} : vector<2x64x1xf32> -> vector<2x64x1xf32>
    %67 = vector.broadcast %66 : vector<2x64x1xf32> to vector<2x64x16xf32>
    %68 = arith.mulf %65, %67 : vector<2x64x16xf32>
    %69 = vector.shape_cast %68 : vector<2x64x16xf32> to vector<128x16xf32>
    %70 = arith.truncf %69 : vector<128x16xf32> to vector<128x16xbf16>
    %c16 = arith.constant 16 : index
    %c0_23 = arith.constant 0 : index
    %71 = vector.load %arg4[%c16, %c0_23] : memref<32x32xbf16, #tpu.memory_space<vmem>>, vector<16x32xbf16>
    %cst_24 = arith.constant dense<0.000000e+00> : vector<128x32xf32>
    %72 = tpu.matmul %70, %71, %cst_24 {dimension_numbers = #tpu.dot_dimension_numbers<[1], [0], [0], [1], [0, 0, 1, 1], [], []>} : vector<128x16xbf16>, vector<16x32xbf16>, vector<128x32xf32> -> vector<128x32xf32>
    %73 = arith.addf %40, %72 : vector<128x32xf32>
    %c0_25 = arith.constant 0 : index
    %c0_26 = arith.constant 0 : index
    %74 = vector.load %arg5[%c0_25, %c0_26] : memref<1x32xf32, #tpu.memory_space<vmem>>, vector<1x32xf32>
    %75 = vector.broadcast %74 : vector<1x32xf32> to vector<128x32xf32>
    %76 = arith.addf %73, %75 : vector<128x32xf32>
    %77 = vector.shape_cast %76 : vector<128x32xf32> to vector<2x64x32xf32>
    %c0_27 = arith.constant 0 : index
    %c0_28 = arith.constant 0 : index
    %c0_29 = arith.constant 0 : index
    %78 = vector.load %arg7[%c0_27, %c0_28, %c0_29] : memref<2x64x32xf32, #tpu.memory_space<vmem>>, vector<2x64x32xf32>
    tpu.vector_store %arg7[%c0_27, %c0_28, %c0_29], %77 {strides = array<i32>} : memref<2x64x32xf32, #tpu.memory_space<vmem>>, vector<2x64x32xf32>,
    return
  }
  func.func @transform_0(%arg0: i32) -> (i32, i32, i32) {
    %c0_i32 = arith.constant 0 : i32
    %c0_i32_0 = arith.constant 0 : i32
    %c0_i32_1 = arith.constant 0 : i32
    return %arg0, %c0_i32, %c0_i32_0 : i32, i32, i32
  }
  func.func @transform_1(%arg0: i32) -> (i32, i32) {
    %c0_i32 = arith.constant 0 : i32
    %c0_i32_0 = arith.constant 0 : i32
    %c0_i32_1 = arith.constant 0 : i32
    return %c0_i32, %c0_i32_0 : i32, i32
  }
  func.func @transform_2(%arg0: i32) -> (i32, i32) {
    %c0_i32 = arith.constant 0 : i32
    %c0_i32_0 = arith.constant 0 : i32
    %c0_i32_1 = arith.constant 0 : i32
    return %c0_i32, %c0_i32_0 : i32, i32
  }
  func.func @transform_3(%arg0: i32) -> (i32, i32) {
    %c0_i32 = arith.constant 0 : i32
    %c0_i32_0 = arith.constant 0 : i32
    %c0_i32_1 = arith.constant 0 : i32
    return %c0_i32, %c0_i32_0 : i32, i32
  }
  func.func @transform_4(%arg0: i32) -> (i32, i32) {
    %c0_i32 = arith.constant 0 : i32
    %c0_i32_0 = arith.constant 0 : i32
    %c0_i32_1 = arith.constant 0 : i32
    return %c0_i32, %c0_i32_0 : i32, i32
  }
  func.func @transform_5(%arg0: i32) -> (i32, i32, i32) {
    %c0_i32 = arith.constant 0 : i32
    %c0_i32_0 = arith.constant 0 : i32
    %c0_i32_1 = arith.constant 0 : i32
    %c0_i32_2 = arith.constant 0 : i32
    return %c0_i32, %c0_i32_0, %c0_i32_1 : i32, i32, i32
  }
  func.func @transform_6(%arg0: i32) -> (i32, i32, i32) {
    %c0_i32 = arith.constant 0 : i32
    %c0_i32_0 = arith.constant 0 : i32
    %c0_i32_1 = arith.constant 0 : i32
    return %arg0, %c0_i32, %c0_i32_0 : i32, i32, i32
  }
}

</mosaic_0001>

<bundles_post_ra>
// kernel: tpu_custom_call.1
= control target key start
LH: loop header
LB: loop body
LE: loop exit
PB: predicated region body
PF: predicated region fallthrough
CT: control target
= control target key end

     0   :  { %s2653_s21 = smov 0   ;;  %s3335_s0 = inlined_call_operand.vmem [shape: bf16[6,64,32], index: 0, kind: input, shape index: {}]   ;;  %s3336_s1 = inlined_call_operand.vmem [shape: bf16[32,96], index: 1, kind: input, shape index: {}]   ;;  %s3337_s2 = inlined_call_operand.vmem [shape: f32[1,96], index: 2, kind: input, shape index: {}]   ;;  %s3338_s3 = inlined_call_operand.vmem [shape: bf16[32,32], index: 3, kind: input, shape index: {}]   ;;  %s3339_s4 = inlined_call_operand.vmem [shape: f32[1,32], index: 4, kind: input, shape index: {}]   ;;  %s3340_s5 = inlined_call_operand.vmem [shape: bf16[2,64,64], index: 5, kind: input, shape index: {}]   ;;  %s3341_s6 = inlined_call_operand.vmem [shape: f32[6,64,32], index: 6, kind: output, shape index: {}]  }
   0x1 LB: > { %s2012_s22 = sadd.s32 4294967295, %s2611_s21   ;;  %p2016_p0 = scmp.ge.s32.totalorder %s2611_s21, 1  ;;  %s2611_s21 = sphi %s2653_s21, %s16_s21  }
   0x2   : > { %p214_p1 = scmp.lt.s32.totalorder %s2611_s21, 4 }
   0x4   : > { %p215_p2 = pnand %p2016_p0, %p214_p1 }
   0x5   : > { %v2465_v0 = vld [vmem:[%s3336_s1] sm:$0xff] (!%p215_p2)   ;;  %s2017_s25 = sshll.u32 (!%p215_p2), %s2012_s22, 1  ;;  %v2466_v1 = vld [vmem:[%s3336_s1 + $0x8] sm:$0xff] (!%p215_p2)   ;;  %vm340_vm0 = vcmask (!%p215_p2), 261120   ;;  %vm498_vm1 = vcmask (!%p215_p2), 130048   ;;  %s2613_s10 = smov (!%p215_p2), 96  }
   0x6   : > { %218 = sbr.rel (%p215_p2) target bundleno = 1738 (0x6ca), region = 44  ;;  %p247_p3 = scmp.lt.s32.totalorder (!%p215_p2), %s2017_s25, 5  ;;  %2236 = vmatprep.subr.bf16.mxu0 (!%p215_p2), %v2465_v0  ;;  %v2023_v11 = vld [vmem:[%s3337_s2] ss:$0 sm:$0xff] (!%p215_p2)  ;;  %vm689_vm2 = vcmask (!%p215_p2), 523264  }
   0x7   : > { %2237 = vmatpush3.bf16.msra.mxu0 (!%p215_p2), %v2465_v0  ;;  %s2614_s11 = smov (!%p215_p2), 64   ;;  %s2615_s12 = smov (!%p215_p2), 80  }
   0x8   : > { %2238 = vmatprep.subr.bf16.mxu0 (!%p215_p2), %v2466_v1  ;;  %s2616_s22 = smov (!%p215_p2), 112   ;;  %s2617_s23 = smov (!%p215_p2), 48  }
   0xb   : > { %2239 = vmatpush3.bf16.msra.mxu0 (!%p215_p2), %v2466_v1 }
   0xd   : > { %s3343_s25 = smov (!%p247_p3, %s2017_s25), 5 }
   0xe   : > { %s2103_s28 = sshll.u32 %s3343_s25, 5  ;;  %s2104_s13 = sshll.u32 %s3343_s25, 6 }
   0xf   : > { %s251_s7 = scalar_lea.vmem %s3335_s0, %s2103_s28  ;;  %s3298_s18 = scalar_lea.vmem %s3341_s6, %s2104_s13 }
  0x10   : > { %v2467_v2 = vld [vmem:[%s251_s7] sm:$0xff]   ;;  %v2468_v3 = vld [vmem:[%s251_s7 + $0x8] sm:$0xff]   ;;  %v2469_v4 = vld [vmem:[%s251_s7 + $0x10] sm:$0xff]  }
  0x11   : > { %2240 = vmatprep.mubr.msk.bf16.mxu0 %vm340_vm0, %v2467_v2  ;;  %v2470_v5 = vld [vmem:[%s251_s7 + $0x18] sm:$0xff]   ;;  %v2471_v6 = vld [vmem:[%s251_s7 + $0x20] sm:$0xff]   ;;  %v2472_v7 = vld [vmem:[%s251_s7 + $0x28] sm:$0xff]  }
  0x12   : > { %2241 = vmatmul.mubr.msk.bf16.vlgmr.msra.gmra.mrb[0].mxu0 %vm340_vm0, %v2468_v3  ;;  %v2473_v8 = vld [vmem:[%s251_s7 + $0x30] sm:$0xff]   ;;  %v2474_v9 = vld [vmem:[%s251_s7 + $0x38] sm:$0xff]  }
  0x13   : > { %2244 = vmatprep.mubr.msk.bf16.mxu0 %vm340_vm0, %v2469_v4 }
  0x1a   : > { %2245 = vmatmul.mubr.msk.bf16.gmra.mrb[4].mxu0 %vm340_vm0, %v2470_v5 }
  0x1b   : > { %2248 = vmatprep.mubr.msk.bf16.mxu0 %vm340_vm0, %v2471_v6 }
  0x22   : > { %2249 = vmatmul.mubr.msk.bf16.gmra.mrb[8].mxu0 %vm340_vm0, %v2472_v7 }
  0x23   : > { %2252 = vmatprep.mubr.msk.bf16.mxu0 %vm340_vm0, %v2473_v8 }
  0x2a   : > { %2253 = vmatmul.mubr.msk.bf16.gmra.mrb[12].mxu0 %vm340_vm0, %v2474_v9 }
  0xe5   : > { %v2242_v10 = vpop.f32.mrb[0].mxu0 }
  0xe6   : > { %v399_v12 = vpop.f32.mrb[1].mxu0  ;;  %v408_v14 = vadd.f32 %v2242_v10, %v2023_v11 }
  0xe7   : > { %v2243_v13 = vpop.f32.mrb[2].mxu0  ;;  %v400_v17 = vadd.f32 %v2023_v11, %v399_v12 }
  0xe8   : > { %v411_v15 = vadd.f32 %v2243_v13, %v2023_v11  ;;  %v402_v16 = vpop.f32.mrb[3].mxu0 }
  0xe9   : > { %v403_v18 = vadd.f32 %v2023_v11, %v402_v16  ;;  %v2137_v16 = vld [vmem:[%s3340_s5 + $0x8] sm:$0xff]  }
  0xea   : > { %v2684_v19 = vpack.c.bf16 %v411_v15, %v408_v14 }
  0xeb   : > { %v2686_v20 = vpack.c.bf16 %v403_v18, %v400_v17  ;;  %v2106_v17 = vld [vmem:[%s3340_s5] sm:$0xff]   ;;  %v2111_v18 = vunpack.c.l.bf16 %v2137_v16 }
  0xed   : > { %490 = vrot.lane.b32.xlu0 %v2686_v20, %s2613_s10  ;;  %2264 = vmatprep.mubr.msk.bf16.mxu0 %vm498_vm1, %v2686_v20  ;;  %v2246_v21 = vpop.f32.mrb[4].mxu0 }
  0xee   : > { %v424_v22 = vadd.f32 %v2246_v21, %v2023_v11  ;;  %v415_v23 = vpop.f32.mrb[5].mxu0  ;;  %v2107_v21 = vunpack.c.l.bf16 %v2106_v17 }
  0xef   : > { %v416_v24 = vadd.f32 %v2023_v11, %v415_v23  ;;  %v2247_v25 = vpop.f32.mrb[6].mxu0  ;;  %v2108_v23 = vunpack.c.h.bf16 %v2106_v17 }
  0xf0   : > { %v427_v26 = vadd.f32 %v2247_v25, %v2023_v11  ;;  %v418_v27 = vpop.f32.mrb[7].mxu0 }
  0xf1   : > { %v419_v28 = vadd.f32 %v2023_v11, %v418_v27  ;;  %492 = vrot.lane.b32.xlu0 %v2684_v19, %s2613_s10  ;;  %v2139_v27 = vld [vmem:[%s3340_s5 + $0x18] sm:$0xff]  }
  0xf2   : > { %v2694_v29 = vpack.c.bf16 %v427_v26, %v424_v22 }
  0xf3   : > { %v2696_v30 = vpack.c.bf16 %v419_v28, %v416_v24 }
  0xf5   : > { %494 = vrot.lane.b32.xlu1 %v2696_v30, %s2613_s10  ;;  %v2250_v31 = vpop.f32.mrb[8].mxu0 }
  0xf6   : > { %v440_v32 = vadd.f32 %v2250_v31, %v2023_v11  ;;  %v431_v33 = vpop.f32.mrb[9].mxu0  ;;  %v2112_v31 = vunpack.c.h.bf16 %v2137_v16 }
  0xf7   : > { %v432_v34 = vadd.f32 %v2023_v11, %v431_v33  ;;  %v2251_v35 = vpop.f32.mrb[10].mxu0 }
  0xf8   : > { %v443_v36 = vadd.f32 %v2251_v35, %v2023_v11  ;;  %v434_v37 = vpop.f32.mrb[11].mxu0  ;;  %v2138_v35 = vld [vmem:[%s3340_s5 + $0x10] sm:$0xff]  }
  0xf9   : > { %496 = vrot.lane.b32.xlu1 %v2694_v29, %s2613_s10  ;;  %v435_v38 = vadd.f32 %v2023_v11, %v434_v37 }
  0xfa   : > { %v2702_v39 = vpack.c.bf16 %v443_v36, %v440_v32  ;;  %v2119_v36 = vunpack.c.l.bf16 %v2139_v27 }
  0xfb   : > { %v2704_v40 = vpack.c.bf16 %v435_v38, %v432_v34 }
  0xfd   : > { %v2254_v41 = vpop.f32.mrb[12].mxu0  ;;  %594 = vrot.lane.b32.xlu1 %v2702_v39, %s2613_s10  ;;  %592 = vrot.lane.b32.xlu0 %v2704_v40, %s2613_s10 }
  0xfe   : > { %v456_v42 = vadd.f32 %v2254_v41, %v2023_v11  ;;  %v447_v43 = vpop.f32.mrb[13].mxu0 }
  0xff   : > { %v448_v44 = vadd.f32 %v2023_v11, %v447_v43  ;;  %v2255_v45 = vpop.f32.mrb[14].mxu0  ;;  %v2120_v43 = vunpack.c.h.bf16 %v2139_v27 }
 0x100   : > { %v459_v46 = vadd.f32 %v2255_v45, %v2023_v11  ;;  %v450_v47 = vpop.f32.mrb[15].mxu0 }
 0x101   : > { %v451_v48 = vadd.f32 %v2023_v11, %v450_v47 }
 0x102   : > { %v2710_v49 = vpack.c.bf16 %v459_v46, %v456_v42  ;;  %v2115_v42 = vunpack.c.l.bf16 %v2138_v35 }
 0x103   : > { %v2712_v50 = vpack.c.bf16 %v451_v48, %v448_v44  ;;  %v2116_v48 = vunpack.c.h.bf16 %v2138_v35 }
 0x104   : > { %598 = vrot.lane.b32.xlu1 %v2710_v49, %s2613_s10 }
 0x105   : > { %596 = vrot.lane.b32.xlu0 %v2712_v50, %s2613_s10 }
 0x108   : > { %842 = vrot.lane.b32.xlu1 %v2686_v20, %s2614_s11 }
 0x109   : > { %844 = vrot.lane.b32.xlu0 %v2684_v19, %s2614_s11 }
 0x10c   : > { %846 = vrot.lane.b32.xlu1 %v2696_v30, %s2614_s11 }
 0x10d   : > { %848 = vrot.lane.b32.xlu0 %v2694_v29, %s2614_s11 }
 0x110   : > { %931 = vrot.lane.b32.xlu1 %v2704_v40, %s2614_s11 }
 0x111   : > { %933 = vrot.lane.b32.xlu0 %v2702_v39, %s2614_s11 }
 0x114   : > { %1087 = vrot.lane.b32.xlu1 %v2686_v20, %s2615_s12 }
 0x115   : > { %937 = vrot.lane.b32.xlu0 %v2710_v49, %s2614_s11 }
 0x118   : > { %1091 = vrot.lane.b32.xlu1 %v2696_v30, %s2615_s12 }
 0x119   : > { %1089 = vrot.lane.b32.xlu0 %v2684_v19, %s2615_s12 }
 0x11c   : > { %1194 = vrot.lane.b32.xlu1 %v2702_v39, %s2615_s12 }
 0x11d   : > { %1192 = vrot.lane.b32.xlu0 %v2704_v40, %s2615_s12 }
 0x120   : > { %935 = vrot.lane.b32.xlu1 %v2712_v50, %s2614_s11 }
 0x121   : > { %1093 = vrot.lane.b32.xlu0 %v2694_v29, %s2615_s12 }
 0x15f   : > { %v491_v51 = vpop.permute.xlu0 %490 }
 0x160   : > { %2436 = vmatprep.subr.msk.bf16.mxu0 %vm498_vm1, %v491_v51  ;;  %v512_v52 = vsel %vm498_vm1, %v491_v51, 0 }
 0x161   : > { %2257 = vmatpush3.bf16.xpose.msra.mxu0 %v512_v52 }
 0x163   : > { %v493_v53 = vpop.permute.xlu0 %492 }
 0x164   : > { %2437 = vmatprep.subr.msk.bf16.mxu0 %vm498_vm1, %v493_v53  ;;  %v515_v55 = vsel %vm498_vm1, %v493_v53, 0 }
 0x167   : > { %v495_v54 = vpop.permute.xlu1 %494 }
 0x168   : > { %v518_v57 = vsel %vm498_vm1, %v495_v54, 0 }
 0x169   : > { %2259 = vmatpush3.bf16.xpose.msra.mxu0 %v515_v55 }
 0x16a   : > { %2438 = vmatprep.subr.msk.bf16.mxu0 %vm498_vm1, %v495_v54 }
 0x16b   : > { %v497_v56 = vpop.permute.xlu1 %496 }
 0x16c   : > { %v521_v62 = vsel %vm498_vm1, %v497_v56, 0 }
 0x16f   : > { %v595_v58 = vpop.permute.xlu1 %594  ;;  %v593_v59 = vpop.permute.xlu0 %592 }
 0x170   : > { %v613_v2 = vsel %vm498_vm1, %v593_v59, 0  ;;  %v616_v5 = vsel %vm498_vm1, %v595_v58, 0 }
 0x171   : > { %2261 = vmatpush3.bf16.xpose.msra.mxu0 %v518_v57 }
 0x172   : > { %2439 = vmatprep.subr.msk.bf16.mxu0 %vm498_vm1, %v497_v56 }
 0x176   : > { %v599_v60 = vpop.permute.xlu1 %598 }
 0x177   : > { %v597_v61 = vpop.permute.xlu0 %596  ;;  %v622_v8 = vsel %vm498_vm1, %v599_v60, 0 }
 0x178   : > { %v619_v7 = vsel %vm498_vm1, %v597_v61, 0 }
 0x179   : > { %2263 = vmatpush3.bf16.xpose.msra.mxu0 %v521_v62 }
 0x17a   : > { %v843_v63 = vpop.permute.xlu1 %842  ;;  %2440 = vmatprep.subr.msk.bf16.mxu0 %vm498_vm1, %v593_v59 }
 0x17b   : > { %2288 = vmatprep.subr.bf16.mxu1 %v843_v63  ;;  %v845_v0 = vpop.permute.xlu0 %844 }
 0x17c   : > { %2289 = vmatpush3.bf16.msra.mxu1 %v843_v63 }
 0x17d   : > { %2290 = vmatprep.subr.bf16.mxu1 %v845_v0 }
 0x17e   : > { %v847_v1 = vpop.permute.xlu1 %846 }
 0x17f   : > { %v849_v4 = vpop.permute.xlu0 %848 }
 0x180   : > { %2265 = vmatmul.mubr.msk.bf16.vlgmr.msra.gmra.mrb[16].mxu0 %vm498_vm1, %v2684_v19  ;;  %2291 = vmatpush3.bf16.msra.mxu1 %v845_v0 }
 0x181   : > { %2268 = vmatprep.mubr.msk.bf16.mxu0 %vm498_vm1, %v2696_v30  ;;  %2273 = vmatpush3.bf16.xpose.msra.mxu0 %v613_v2 }
 0x182   : > { %2292 = vmatprep.subr.bf16.mxu1 %v847_v1  ;;  %2441 = vmatprep.subr.msk.bf16.mxu0 %vm498_vm1, %v595_v58  ;;  %v932_v3 = vpop.permute.xlu1 %931 }
 0x183   : > { %v934_v10 = vpop.permute.xlu0 %933 }
 0x184   : > { %2293 = vmatpush3.bf16.msra.mxu1 %v847_v1 }
 0x185   : > { %2294 = vmatprep.subr.bf16.mxu1 %v849_v4 }
 0x186   : > { %v2756_v6 = vpop.permute.xlu1 %1087 }
 0x187   : > { %v938_v12 = vpop.permute.xlu0 %937 }
 0x188   : > { %2269 = vmatmul.mubr.msk.bf16.gmra.mrb[20].mxu0 %vm498_vm1, %v2694_v29  ;;  %2295 = vmatpush3.bf16.msra.mxu1 %v849_v4 }
 0x189   : > { %2275 = vmatpush3.bf16.xpose.msra.mxu0 %v616_v5  ;;  %2280 = vmatprep.mubr.msk.bf16.mxu0 %vm498_vm1, %v2704_v40 }
 0x18a   : > { %2444 = vmatprep.subr.msk.bf16.mxu1 %vm498_vm1, %v2756_v6  ;;  %2442 = vmatprep.subr.msk.bf16.mxu0 %vm498_vm1, %v597_v61  ;;  %v2766_v9 = vpop.permute.xlu1 %1091 }
 0x18b   : > { %v2774_v14 = vpop.permute.xlu0 %1089 }
 0x18e   : > { %v2768_v11 = vpop.permute.xlu1 %1194 }
 0x18f   : > { %v2778_v15 = vpop.permute.xlu0 %1192 }
 0x191   : > { %2277 = vmatpush3.bf16.xpose.msra.mxu0 %v619_v7 }
 0x192   : > { %2443 = vmatprep.subr.msk.bf16.mxu0 %vm498_vm1, %v599_v60  ;;  %v936_v13 = vpop.permute.xlu1 %935 }
 0x199   : > { %2279 = vmatpush3.bf16.xpose.msra.mxu0 %v622_v8 }
 0x19a   : > { %2304 = vmatprep.subr.bf16.mxu0 %v932_v3 }
 0x1a0   : > { %2281 = vmatmul.mubr.msk.bf16.vlgmr.msra.gmra.mrb[24].mxu0 %vm498_vm1, %v2702_v39 }
 0x1a1   : > { %2284 = vmatprep.mubr.msk.bf16.mxu0 %vm498_vm1, %v2712_v50  ;;  %2305 = vmatpush3.bf16.msra.mxu0 %v932_v3 }
 0x1a2   : > { %2306 = vmatprep.subr.bf16.mxu0 %v934_v10 }
 0x1a5   : > { %2307 = vmatpush3.bf16.msra.mxu0 %v934_v10 }
 0x1a6   : > { %2308 = vmatprep.subr.bf16.mxu0 %v936_v13 }
 0x1a8   : > { %2285 = vmatmul.mubr.msk.bf16.gmra.mrb[28].mxu0 %vm498_vm1, %v2710_v49 }
 0x1a9   : > { %2309 = vmatpush3.bf16.msra.mxu0 %v936_v13 }
 0x1aa   : > { %2310 = vmatprep.subr.bf16.mxu0 %v938_v12 }
 0x1ad   : > { %2311 = vmatpush3.bf16.msra.mxu0 %v938_v12 }
 0x1ae   : > { %2448 = vmatprep.subr.msk.bf16.mxu0 %vm498_vm1, %v2778_v15 }
 0x253   : > { %v2266_v22 = vpop.f32.mrb[16].mxu0 }
 0x254   : > { %v2788_v24 = vadd.f32 %v2266_v22, %v2111_v18  ;;  %v557_v25 = vpop.f32.mrb[17].mxu0 }
 0x255   : > { %v2267_v26 = vpop.f32.mrb[18].mxu0  ;;  %v2793_v28 = vadd.f32 %v2107_v21, %v557_v25 }
 0x256   : > { %v560_v32 = vpop.f32.mrb[19].mxu0  ;;  %v696_v33 = vsel %vm689_vm2, %v2788_v24, -inf  ;;  %v2804_v38 = vadd.f32 %v2267_v26, %v2112_v31 }
 0x257   : > { %v2797_v34 = vadd.f32 %v2108_v23, %v560_v32  ;;  %697 = vmax.xlane.f32.xlu0 %v696_v33  ;;  %v690_v41 = vsel %vm689_vm2, %v2793_v28, -inf }
 0x258   : > { %v699_v55 = vsel %vm689_vm2, %v2804_v38, -inf }
 0x259   : > { %v693_v37 = vsel %vm689_vm2, %v2797_v34, -inf }
 0x25a   : > { %694 = vmax.xlane.f32.xlu1 %v693_v37 }
 0x25b   : > { %v2270_v44 = vpop.f32.mrb[20].mxu0  ;;  %691 = vmax.xlane.f32.xlu0 %v690_v41 }
 0x25c   : > { %v2808_v45 = vadd.f32 %v2270_v44, %v2119_v36  ;;  %v573_v46 = vpop.f32.mrb[21].mxu0 }
 0x25d   : > { %v2271_v47 = vpop.f32.mrb[22].mxu0  ;;  %v2810_v51 = vadd.f32 %v2115_v42, %v573_v46 }
 0x25e   : > { %v2812_v52 = vadd.f32 %v2271_v47, %v2120_v43  ;;  %v576_v53 = vpop.f32.mrb[23].mxu0  ;;  %v708_v54 = vsel %vm689_vm2, %v2808_v45, -inf }
 0x25f   : > { %709 = vmax.xlane.f32.xlu1 %v708_v54  ;;  %700 = vmax.xlane.f32.xlu0 %v699_v55  ;;  %v2818_v56 = vadd.f32 %v2116_v48, %v576_v53  ;;  %v702_v57 = vsel %vm689_vm2, %v2810_v51, -inf }
 0x260   : > { %v711_v58 = vsel %vm689_vm2, %v2812_v52, -inf }
 0x261   : > { %v705_v59 = vsel %vm689_vm2, %v2818_v56, -inf }
 0x263   : > { %703 = vmax.xlane.f32.xlu1 %v702_v57  ;;  %712 = vmax.xlane.f32.xlu0 %v711_v58 }
 0x267   : > { %706 = vmax.xlane.f32.xlu0 %v705_v59 }
 0x273   : > { %v2282_v60 = vpop.f32.mrb[24].mxu0 }
 0x274   : > { %v2826_v61 = vadd.f32 %v2282_v60, %v2111_v18  ;;  %v658_v62 = vpop.f32.mrb[25].mxu0  ;;  %v1108_v60 = vsel %vm498_vm1, %v2756_v6, 0 }
 0x275   : > { %v2283_v63 = vpop.f32.mrb[26].mxu0  ;;  %v2828_v0 = vadd.f32 %v2107_v21, %v658_v62 }
 0x276   : > { %v2830_v1 = vadd.f32 %v2283_v63, %v2112_v31  ;;  %v661_v2 = vpop.f32.mrb[27].mxu0  ;;  %v720_v3 = vsel %vm689_vm2, %v2826_v61, -inf  ;;  %v2876_v31 = vpop.permute.xlu0 %1093 }
 0x277   : > { %721 = vmax.xlane.f32.xlu1 %v720_v3  ;;  %v2834_v4 = vadd.f32 %v2108_v23, %v661_v2  ;;  %v714_v7 = vsel %vm689_vm2, %v2828_v0, -inf }
 0x278   : > { %v723_v5 = vsel %vm689_vm2, %v2830_v1, -inf }
 0x279   : > { %724 = vmax.xlane.f32.xlu0 %v723_v5  ;;  %v717_v13 = vsel %vm689_vm2, %v2834_v4, -inf }
 0x27b   : > { %v2286_v8 = vpop.f32.mrb[28].mxu0  ;;  %715 = vmax.xlane.f32.xlu1 %v714_v7 }
 0x27c   : > { %v2840_v10 = vadd.f32 %v2286_v8, %v2119_v36  ;;  %v674_v12 = vpop.f32.mrb[29].mxu0 }
 0x27d   : > { %v2844_v16 = vadd.f32 %v2115_v42, %v674_v12  ;;  %v2287_v17 = vpop.f32.mrb[30].mxu0  ;;  %718 = vmax.xlane.f32.xlu0 %v717_v13  ;;  %v1111_v12 = vsel %vm498_vm1, %v2774_v14, 0 }
 0x27e   : > { %v2846_v18 = vadd.f32 %v2287_v17, %v2120_v43  ;;  %v677_v21 = vpop.f32.mrb[31].mxu0  ;;  %v732_v23 = vsel %vm689_vm2, %v2840_v10, -inf }
 0x27f   : > { %v2848_v22 = vadd.f32 %v2116_v48, %v677_v21  ;;  %v726_v26 = vsel %vm689_vm2, %v2844_v16, -inf }
 0x280   : > { %v735_v27 = vsel %vm689_vm2, %v2846_v18, -inf }
 0x281   : > { %v729_v25 = vsel %vm689_vm2, %v2848_v22, -inf }
 0x28c   : > { %1081 = vrot.lane.b32.xlu1 %v2684_v19, %s2616_s22 }
 0x293   : > { %1079 = vrot.lane.b32.xlu0 %v2686_v20, %s2616_s22 }
 0x2b0   : > { %733 = vmax.xlane.f32.xlu1 %v732_v23 }
 0x2b2   : > { %730 = vmax.xlane.f32.xlu0 %v729_v25 }
 0x2b4   : > { %727 = vmax.xlane.f32.xlu1 %v726_v26 }
 0x2b8   : > { %736 = vmax.xlane.f32.xlu1 %v735_v27 }
 0x2c8   : > { %1196 = vrot.lane.b32.xlu0 %v2712_v50, %s2615_s12 }
 0x2c9   : > { %1083 = vrot.lane.b32.xlu1 %v2696_v30, %s2616_s22 }
 0x2cc   : > { %1085 = vrot.lane.b32.xlu0 %v2694_v29, %s2616_s22 }
 0x2cd   : > { %1198 = vrot.lane.b32.xlu1 %v2710_v49, %s2615_s12 }
 0x2d0   : > { %1184 = vrot.lane.b32.xlu0 %v2704_v40, %s2616_s22 }
 0x2d1   : > { %1186 = vrot.lane.b32.xlu1 %v2702_v39, %s2616_s22 }
 0x2d4   : > { %1188 = vrot.lane.b32.xlu0 %v2712_v50, %s2616_s22 }
 0x2d5   : > { %1190 = vrot.lane.b32.xlu1 %v2710_v49, %s2616_s22 }
 0x2d8   : > { %1443 = vrot.lane.b32.xlu0 %v2684_v19, %s2617_s23 }
 0x2d9   : > { %1441 = vrot.lane.b32.xlu1 %v2686_v20, %s2617_s23 }
 0x2dd   : > { %1445 = vrot.lane.b32.xlu1 %v2696_v30, %s2617_s23 }
 0x2e1   : > { %1447 = vrot.lane.b32.xlu1 %v2694_v29, %s2617_s23 }
 0x2e4   : > { %v698_v32 = vpop.xlane.xlu0 %697 }
 0x2e5   : > { %v740_v37 = vsub.f32 %v2788_v24, %v698_v32 }
 0x2e7   : > { %v695_v33 = vpop.xlane.xlu1 %694  ;;  %v758_v30 = vmul.f32 1.442695, %v740_v37 }
 0x2e8   : > { %v739_v35 = vsub.f32 %v2797_v34, %v695_v33  ;;  %v692_v36 = vpop.xlane.xlu0 %691 }
 0x2e9   : > { %v738_v19 = vsub.f32 %v2793_v28, %v692_v36 }
 0x2ea   : > { %v756_v41 = vmul.f32 1.442695, %v739_v35 }
 0x2eb   : > { %v754_v42 = vmul.f32 1.442695, %v738_v19 }
 0x2ec   : > { %2477 = vpow2.f32 %v756_v41  ;;  %v710_v20 = vpop.xlane.xlu1 %709  ;;  %v701_v43 = vpop.xlane.xlu0 %700  ;;  %v1213_v41 = vsel %vm498_vm1, %v2778_v15, 0 }
 0x2ed   : > { %2479 = vpow2.f32 %v754_v42  ;;  %v741_v44 = vsub.f32 %v2804_v38, %v701_v43  ;;  %v744_v24 = vsub.f32 %v2808_v45, %v710_v20  ;;  %v1216_v42 = vsel %vm498_vm1, %v2768_v11, 0 }
 0x2ee   : > { %2481 = vpow2.f32 %v758_v30 }
 0x2ef   : > { %v760_v46 = vmul.f32 1.442695, %v741_v44  ;;  %v766_v58 = vmul.f32 1.442695, %v744_v24 }
 0x2f0   : > { %v704_v29 = vpop.xlane.xlu1 %703  ;;  %v713_v47 = vpop.xlane.xlu0 %712 }
 0x2f1   : > { %v742_v34 = vsub.f32 %v2810_v51, %v704_v29  ;;  %v745_v48 = vsub.f32 %v2812_v52, %v713_v47  ;;  %2483 = vpow2.f32 %v760_v46 }
 0x2f3   : > { %v762_v28 = vmul.f32 1.442695, %v742_v34  ;;  %v768_v53 = vmul.f32 1.442695, %v745_v48 }
 0x2f4   : > { %v707_v54 = vpop.xlane.xlu0 %706 }
 0x2f5   : > { %v743_v55 = vsub.f32 %v2818_v56, %v707_v54  ;;  %2485 = vpow2.f32 %v762_v28 }
 0x2f6   : > { %v2888_v57 = vpop.eup %2477  ;;  %2487 = vpow2.f32 %v768_v53 }
 0x2f7   : > { %v2890_v38 = vpop.eup %2479  ;;  %v764_v59 = vmul.f32 1.442695, %v743_v55 }
 0x2f8   : > { %v834_v51 = vpack.c.bf16 %v2888_v57, %v2890_v38  ;;  %v2895_v45 = vpop.eup %2481 }
 0x2f9   : > { %2489 = vpow2.f32 %v764_v59 }
 0x2fa   : > { %2491 = vpow2.f32 %v766_v58  ;;  %2296 = vmatprep.mubr.msk.bf16.mxu1 %vm689_vm2, %v834_v51 }
 0x2fb   : > { %v2897_v52 = vpop.eup %2483 }
 0x2fc   : > { %v835_v56 = vpack.c.bf16 %v2897_v52, %v2895_v45 }
 0x2fe   : > { %2297 = vmatmul.mubr.msk.bf16.vlgmr.msra.gmra.mrb[0].mxu1 %vm689_vm2, %v835_v56 }
 0x2ff   : > { %2321 = vmatpush3.bf16.xpose.msra.mxu1 %v1108_v60  ;;  %v2904_v62 = vpop.eup %2485 }
 0x300   : > { %2445 = vmatprep.subr.msk.bf16.mxu1 %vm498_vm1, %v2774_v14  ;;  %v2908_v63 = vpop.eup %2487 }
 0x303   : > { %v2910_v2 = vpop.eup %2489 }
 0x304   : > { %v2912_v3 = vpop.eup %2491  ;;  %v722_v5 = vpop.xlane.xlu1 %721  ;;  %v836_v7 = vpack.c.bf16 %v2910_v2, %v2904_v62 }
 0x305   : > { %v837_v6 = vpack.c.bf16 %v2908_v63, %v2912_v3  ;;  %v748_v17 = vsub.f32 %v2826_v61, %v722_v5  ;;  %v1114_v61 = vsel %vm498_vm1, %v2766_v9, 0 }
 0x306   : > { %2300 = vmatprep.mubr.msk.bf16.mxu1 %vm689_vm2, %v836_v7  ;;  %v725_v8 = vpop.xlane.xlu0 %724 }
 0x307   : > { %v749_v13 = vsub.f32 %v2830_v1, %v725_v8  ;;  %2301 = vmatmul.mubr.msk.bf16.gmra.mrb[4].mxu1 %vm689_vm2, %v837_v6  ;;  %v774_v33 = vmul.f32 1.442695, %v748_v17 }
 0x308   : > { %2323 = vmatpush3.bf16.xpose.msra.mxu1 %v1111_v12  ;;  %v716_v21 = vpop.xlane.xlu1 %715 }
 0x309   : > { %v776_v23 = vmul.f32 1.442695, %v749_v13  ;;  %2446 = vmatprep.subr.msk.bf16.mxu1 %vm498_vm1, %v2766_v9  ;;  %v746_v25 = vsub.f32 %v2828_v0, %v716_v21 }
 0x30a   : > { %v719_v26 = vpop.xlane.xlu0 %718 }
 0x30b   : > { %v770_v27 = vmul.f32 1.442695, %v746_v25  ;;  %v747_v32 = vsub.f32 %v2834_v4, %v719_v26  ;;  %2493 = vpow2.f32 %v776_v23  ;;  %v1117_v4 = vsel %vm498_vm1, %v2876_v31, 0 }
 0x30d   : > { %v772_v14 = vmul.f32 1.442695, %v747_v32  ;;  %2495 = vpow2.f32 %v770_v27 }
 0x30e   : > { %v1080_v1 = vpop.permute.xlu0 %1079 }
 0x30f   : > { %2497 = vpow2.f32 %v772_v14  ;;  %2328 = vmatprep.mubr.msk.bf16.mxu1 %vm498_vm1, %v1080_v1  ;;  %v2141_v1 = vld [vmem:[%s3340_s5 + $0x28] sm:$0xff]  }
 0x310   : > { %2499 = vpow2.f32 %v774_v33  ;;  %2325 = vmatpush3.bf16.xpose.msra.mxu1 %v1114_v61  ;;  %v2140_v61 = vld [vmem:[%s3340_s5 + $0x20] sm:$0xff]  }
 0x311   : > { %2447 = vmatprep.subr.msk.bf16.mxu1 %vm498_vm1, %v2876_v31  ;;  %v1082_v31 = vpop.permute.xlu1 %1081 }
 0x315   : > { %v2933_v0 = vpop.eup %2493 }
 0x317   : > { %v2937_v35 = vpop.eup %2495 }
 0x318   : > { %2327 = vmatpush3.bf16.xpose.msra.mxu1 %v1117_v4  ;;  %v2127_v4 = vunpack.c.l.bf16 %v2141_v1 }
 0x319   : > { %v2939_v36 = vpop.eup %2497 }
 0x31a   : > { %v2941_v37 = vpop.eup %2499  ;;  %v838_v9 = vpack.c.bf16 %v2939_v36, %v2937_v35 }
 0x31b   : > { %v839_v19 = vpack.c.bf16 %v2933_v0, %v2941_v37 }
 0x31c   : > { %2312 = vmatprep.mubr.msk.bf16.mxu0 %vm689_vm2, %v838_v9 }
 0x31d   : > { %2313 = vmatmul.mubr.msk.bf16.vlgmr.msra.gmra.mrb[32].mxu0 %vm689_vm2, %v839_v19 }
 0x31e   : > { %2337 = vmatpush3.bf16.xpose.msra.mxu0 %v1213_v41  ;;  %v2123_v41 = vunpack.c.l.bf16 %v2140_v61 }
 0x31f   : > { %2329 = vmatmul.mubr.msk.bf16.vlgmr.msra.gmra.mrb[8].mxu1 %vm498_vm1, %v1082_v31  ;;  %2449 = vmatprep.subr.msk.bf16.mxu0 %vm498_vm1, %v2768_v11 }
 0x326   : > { %2339 = vmatpush3.bf16.xpose.msra.mxu0 %v1216_v42 }
 0x33d   : > { %v734_v20 = vpop.xlane.xlu1 %733 }
 0x33e   : > { %v752_v44 = vsub.f32 %v2840_v10, %v734_v20  ;;  %v2124_v20 = vunpack.c.h.bf16 %v2140_v61 }
 0x33f   : > { %v731_v43 = vpop.xlane.xlu0 %730 }
 0x340   : > { %v751_v30 = vsub.f32 %v2848_v22, %v731_v43  ;;  %v782_v24 = vmul.f32 1.442695, %v752_v44 }
 0x341   : > { %v728_v15 = vpop.xlane.xlu1 %727 }
 0x342   : > { %v780_v46 = vmul.f32 1.442695, %v751_v30  ;;  %v750_v29 = vsub.f32 %v2844_v16, %v728_v15 }
 0x343   : > { %v1197_v47 = vpop.permute.xlu0 %1196 }
 0x344   : > { %v778_v34 = vmul.f32 1.442695, %v750_v29  ;;  %v1219_v48 = vsel %vm498_vm1, %v1197_v47, 0  ;;  %2450 = vmatprep.subr.msk.bf16.mxu0 %vm498_vm1, %v1197_v47  ;;  %2501 = vpow2.f32 %v780_v46  ;;  %v2128_v29 = vunpack.c.h.bf16 %v2141_v1 }
 0x345   : > { %v737_v11 = vpop.xlane.xlu1 %736  ;;  %2341 = vmatpush3.bf16.xpose.msra.mxu0 %v1219_v48 }
 0x346   : > { %2503 = vpow2.f32 %v778_v34  ;;  %v753_v28 = vsub.f32 %v2846_v18, %v737_v11 }
 0x347   : > { %2505 = vpow2.f32 %v782_v24  ;;  %v1086_v10 = vpop.permute.xlu0 %1085 }
 0x348   : > { %v784_v22 = vmul.f32 1.442695, %v753_v28 }
 0x349   : > { %v1084_v53 = vpop.permute.xlu1 %1083 }
 0x34a   : > { %2507 = vpow2.f32 %v784_v22  ;;  %2332 = vmatprep.mubr.msk.bf16.mxu1 %vm498_vm1, %v1084_v53  ;;  %v2142_v53 = vld [vmem:[%s3340_s5 + $0x30] sm:$0xff]  }
 0x34b   : > { %2333 = vmatmul.mubr.msk.bf16.gmra.mrb[12].mxu1 %vm498_vm1, %v1086_v10  ;;  %v1185_v58 = vpop.permute.xlu0 %1184  ;;  %v2143_v10 = vld [vmem:[%s3340_s5 + $0x38] sm:$0xff]  }
 0x34d   : > { %v1199_v16 = vpop.permute.xlu1 %1198 }
 0x34e   : > { %v1222_v54 = vsel %vm498_vm1, %v1199_v16, 0  ;;  %2451 = vmatprep.subr.msk.bf16.mxu0 %vm498_vm1, %v1199_v16  ;;  %v2966_v55 = vpop.eup %2501  ;;  %v2135_v16 = vunpack.c.l.bf16 %v2143_v10 }
 0x34f   : > { %2343 = vmatpush3.bf16.xpose.msra.mxu0 %v1222_v54  ;;  %v1189_v5 = vpop.permute.xlu0 %1188  ;;  %v2131_v54 = vunpack.c.l.bf16 %v2142_v53 }
 0x350   : > { %v2968_v59 = vpop.eup %2503 }
 0x351   : > { %v1187_v18 = vpop.permute.xlu1 %1186  ;;  %v840_v51 = vpack.c.bf16 %v2966_v55, %v2968_v59  ;;  %v2972_v56 = vpop.eup %2505 }
 0x353   : > { %2316 = vmatprep.mubr.msk.bf16.mxu0 %vm689_vm2, %v840_v51  ;;  %v1444_v12 = vpop.permute.xlu0 %1443 }
 0x354   : > { %v2975_v60 = vpop.eup %2507 }
 0x355   : > { %v1191_v7 = vpop.permute.xlu1 %1190  ;;  %v841_v6 = vpack.c.bf16 %v2975_v60, %v2972_v56 }
 0x357   : > { %2317 = vmatmul.mubr.msk.bf16.gmra.mrb[36].mxu0 %vm689_vm2, %v841_v6 }
 0x358   : > { %2344 = vmatprep.mubr.msk.bf16.mxu0 %vm498_vm1, %v1185_v58  ;;  %v2136_v58 = vunpack.c.h.bf16 %v2143_v10 }
 0x359   : > { %v1442_v8 = vpop.permute.xlu1 %1441 }
 0x35a   : > { %2352 = vmatprep.subr.bf16.mxu1 %v1442_v8 }
 0x35b   : > { %2353 = vmatpush3.bf16.msra.mxu1 %v1442_v8 }
 0x35c   : > { %2354 = vmatprep.subr.bf16.mxu1 %v1444_v12 }
 0x35d   : > { %v1446_v13 = vpop.permute.xlu1 %1445 }
 0x35f   : > { %2345 = vmatmul.mubr.msk.bf16.vlgmr.msra.gmra.mrb[40].mxu0 %vm498_vm1, %v1187_v18  ;;  %2355 = vmatpush3.bf16.msra.mxu1 %v1444_v12 }
 0x360   : > { %2348 = vmatprep.mubr.msk.bf16.mxu0 %vm498_vm1, %v1189_v5  ;;  %2356 = vmatprep.subr.bf16.mxu1 %v1446_v13 }
 0x361   : > { %v1448_v17 = vpop.permute.xlu1 %1447 }
 0x363   : > { %2357 = vmatpush3.bf16.msra.mxu1 %v1446_v13 }
 0x364   : > { %2358 = vmatprep.subr.bf16.mxu1 %v1448_v17 }
 0x367   : > { %2349 = vmatmul.mubr.msk.bf16.gmra.mrb[44].mxu0 %vm498_vm1, %v1191_v7  ;;  %2359 = vmatpush3.bf16.msra.mxu1 %v1448_v17  ;;  %v2132_v7 = vunpack.c.h.bf16 %v2142_v53 }
 0x3d1   : > { %v2984_v21 = vpop.f32.mrb[0].mxu1 }
 0x3d2   : > { %v2986_v23 = vpop.f32.mrb[1].mxu1 }
 0x3d3   : > { %v2988_v25 = vpop.f32.mrb[2].mxu1 }
 0x3d4   : > { %v2990_v26 = vpop.f32.mrb[3].mxu1 }
 0x3da   : > { %v2992_v27 = vpop.f32.mrb[4].mxu1 }
 0x3db   : > { %v2994_v32 = vpop.f32.mrb[5].mxu1 }
 0x3dc   : > { %v2996_v33 = vpop.f32.mrb[6].mxu1 }
 0x3dd   : > { %v2998_v14 = vpop.f32.mrb[7].mxu1 }
 0x3f0   : > { %v3006_v9 = vpop.f32.mrb[32].mxu0 }
 0x3f1   : > { %v3008_v19 = vpop.f32.mrb[33].mxu0 }
 0x3f2   : > { %v2330_v31 = vpop.f32.mrb[8].mxu1  ;;  %v3010_v42 = vpop.f32.mrb[34].mxu0 }
 0x3f3   : > { %v3012_v43 = vadd.f32 %v2330_v31, %v2127_v4  ;;  %v1153_v30 = vpop.f32.mrb[9].mxu1  ;;  %v3014_v44 = vpop.f32.mrb[35].mxu0 }
 0x3f4   : > { %v2331_v15 = vpop.f32.mrb[10].mxu1  ;;  %v3016_v46 = vadd.f32 %v2123_v41, %v1153_v30 }
 0x3f5   : > { %v1156_v47 = vpop.f32.mrb[11].mxu1  ;;  %v1295_v34 = vsel %vm689_vm2, %v3012_v43, -inf  ;;  %v3024_v11 = vadd.f32 %v2331_v15, %v2128_v29 }
 0x3f6   : > { %v3020_v48 = vadd.f32 %v2124_v20, %v1156_v47  ;;  %1296 = vmax.xlane.f32.xlu0 %v1295_v34  ;;  %v1289_v28 = vsel %vm689_vm2, %v3016_v46, -inf }
 0x3f7   : > { %v1298_v22 = vsel %vm689_vm2, %v3024_v11, -inf }
 0x3f8   : > { %v1292_v24 = vsel %vm689_vm2, %v3020_v48, -inf }
 0x3f9   : > { %1293 = vmax.xlane.f32.xlu1 %v1292_v24 }
 0x3fa   : > { %1290 = vmax.xlane.f32.xlu0 %v1289_v28 }
 0x3fe   : > { %1299 = vmax.xlane.f32.xlu0 %v1298_v22 }
 0x41e   : > { %v2334_v18 = vpop.f32.mrb[12].mxu1 }
 0x41f   : > { %v3036_v51 = vadd.f32 %v2334_v18, %v2135_v16  ;;  %v1169_v5 = vpop.f32.mrb[13].mxu1 }
 0x420   : > { %v2335_v6 = vpop.f32.mrb[14].mxu1  ;;  %v3038_v8 = vadd.f32 %v2131_v54, %v1169_v5 }
 0x421   : > { %v3040_v12 = vadd.f32 %v2335_v6, %v2136_v58  ;;  %v1172_v13 = vpop.f32.mrb[15].mxu1  ;;  %v1307_v17 = vsel %vm689_vm2, %v3036_v51, -inf }
 0x422   : > { %1308 = vmax.xlane.f32.xlu1 %v1307_v17  ;;  %v3044_v1 = vadd.f32 %v2132_v7, %v1172_v13  ;;  %v1301_v31 = vsel %vm689_vm2, %v3038_v8, -inf }
 0x423   : > { %v1310_v61 = vsel %vm689_vm2, %v3040_v12, -inf }
 0x424   : > { %1311 = vmax.xlane.f32.xlu0 %v1310_v61  ;;  %v1304_v30 = vsel %vm689_vm2, %v3044_v1, -inf }
 0x426   : > { %1302 = vmax.xlane.f32.xlu1 %v1301_v31 }
 0x428   : > { %1305 = vmax.xlane.f32.xlu0 %v1304_v30 }
 0x42a   : > { %v3052_v15 = vpop.f32.mrb[36].mxu0 }
 0x42b   : > { %v3054_v47 = vpop.f32.mrb[37].mxu0 }
 0x42c   : > { %v3056_v34 = vpop.f32.mrb[38].mxu0 }
 0x42d   : > { %v3058_v24 = vpop.f32.mrb[39].mxu0 }
 0x432   : > { %v2346_v28 = vpop.f32.mrb[40].mxu0 }
 0x433   : > { %v3060_v22 = vadd.f32 %v2346_v28, %v2127_v4  ;;  %v1258_v10 = vpop.f32.mrb[41].mxu0 }
 0x434   : > { %v3062_v53 = vadd.f32 %v2123_v41, %v1258_v10  ;;  %v2347_v18 = vpop.f32.mrb[42].mxu0 }
 0x435   : > { %v3064_v5 = vadd.f32 %v2347_v18, %v2128_v29  ;;  %v1261_v6 = vpop.f32.mrb[43].mxu0  ;;  %v1319_v13 = vsel %vm689_vm2, %v3060_v22, -inf }
 0x436   : > { %v3068_v17 = vadd.f32 %v2124_v20, %v1261_v6  ;;  %1320 = vmax.xlane.f32.xlu0 %v1319_v13  ;;  %v1313_v61 = vsel %vm689_vm2, %v3062_v53, -inf }
 0x437   : > { %1314 = vmax.xlane.f32.xlu1 %v1313_v61  ;;  %v1322_v4 = vsel %vm689_vm2, %v3064_v5, -inf }
 0x438   : > { %v1316_v20 = vsel %vm689_vm2, %v3068_v17, -inf }
 0x43a   : > { %1323 = vmax.xlane.f32.xlu0 %v1322_v4  ;;  %v2350_v41 = vpop.f32.mrb[44].mxu0 }
 0x43b   : > { %v1274_v31 = vpop.f32.mrb[45].mxu0  ;;  %v3076_v28 = vadd.f32 %v2350_v41, %v2135_v16 }
 0x43c   : > { %v3074_v30 = vadd.f32 %v2131_v54, %v1274_v31  ;;  %v2351_v29 = vpop.f32.mrb[46].mxu0 }
 0x43d   : > { %v1277_v10 = vpop.f32.mrb[47].mxu0  ;;  %v3082_v6 = vadd.f32 %v2351_v29, %v2136_v58  ;;  %v1331_v13 = vsel %vm689_vm2, %v3076_v28, -inf }
 0x43e   : > { %1317 = vmax.xlane.f32.xlu0 %v1316_v20  ;;  %v1325_v18 = vsel %vm689_vm2, %v3074_v30, -inf  ;;  %v3086_v54 = vadd.f32 %v2132_v7, %v1277_v10 }
 0x43f   : > { %1326 = vmax.xlane.f32.xlu1 %v1325_v18  ;;  %v1334_v16 = vsel %vm689_vm2, %v3082_v6, -inf }
 0x440   : > { %v1328_v61 = vsel %vm689_vm2, %v3086_v54, -inf }
 0x442   : > { %1332 = vmax.xlane.f32.xlu0 %v1331_v13 }
 0x446   : > { %1335 = vmax.xlane.f32.xlu0 %v1334_v16 }
 0x44a   : > { %1329 = vmax.xlane.f32.xlu0 %v1328_v61 }
 0x450   : > { %1532 = vrot.lane.b32.xlu1 %v2702_v39, %s2617_s23 }
 0x454   : > { %1534 = vrot.lane.b32.xlu1 %v2712_v50, %s2617_s23 }
 0x458   : > { %1536 = vrot.lane.b32.xlu1 %v2710_v49, %s2617_s23 }
 0x460   : > { %1530 = vrot.lane.b32.xlu0 %v2704_v40, %s2617_s23 }
 0x483   : > { %v1297_v58 = vpop.xlane.xlu0 %1296 }
 0x484   : > { %v1339_v7 = vsub.f32 %v3012_v43, %v1297_v58 }
 0x486   : > { %v1294_v4 = vpop.xlane.xlu1 %1293  ;;  %v1357_v39 = vmul.f32 1.442695, %v1339_v7 }
 0x487   : > { %v1338_v41 = vsub.f32 %v3020_v48, %v1294_v4  ;;  %v1291_v31 = vpop.xlane.xlu0 %1290 }
 0x488   : > { %v1337_v29 = vsub.f32 %v3016_v46, %v1291_v31 }
 0x489   : > { %v1355_v10 = vmul.f32 1.442695, %v1338_v41 }
 0x48a   : > { %v1353_v20 = vmul.f32 1.442695, %v1337_v29 }
 0x48b   : > { %2509 = vpow2.f32 %v1355_v10  ;;  %v1300_v50 = vpop.xlane.xlu0 %1299 }
 0x48c   : > { %2511 = vpow2.f32 %v1353_v20  ;;  %v1340_v49 = vsub.f32 %v3024_v11, %v1300_v50 }
 0x48d   : > { %2513 = vpow2.f32 %v1357_v39 }
 0x48e   : > { %v1359_v18 = vmul.f32 1.442695, %v1340_v49 }
 0x490   : > { %2515 = vpow2.f32 %v1359_v18 }
 0x495   : > { %v2510_v40 = vpop.eup %2509 }
 0x496   : > { %v2512_v13 = vpop.eup %2511  ;;  %v1388_v43 = vsel %vm689_vm2, %v2510_v40, 0.0 }
 0x497   : > { %1389 = vadd.xlane.f32.xlu0 %v1388_v43  ;;  %v1385_v48 = vsel %vm689_vm2, %v2512_v13, 0.0  ;;  %v1433_v16 = vpack.c.bf16 %v2510_v40, %v2512_v13  ;;  %v2514_v46 = vpop.eup %2513 }
 0x498   : > { %1386 = vadd.xlane.f32.xlu1 %v1385_v48  ;;  %v1391_v7 = vsel %vm689_vm2, %v2514_v46, 0.0 }
 0x499   : > { %2360 = vmatprep.mubr.msk.bf16.mxu1 %vm689_vm2, %v1433_v16 }
 0x49a   : > { %v2516_v61 = vpop.eup %2515 }
 0x49b   : > { %v1434_v58 = vpack.c.bf16 %v2516_v61, %v2514_v46  ;;  %v1394_v11 = vsel %vm689_vm2, %v2516_v61, 0.0 }
 0x49c   : > { %1392 = vadd.xlane.f32.xlu1 %v1391_v7  ;;  %1395 = vadd.xlane.f32.xlu0 %v1394_v11 }
 0x49d   : > { %2361 = vmatmul.mubr.msk.bf16.vlgmr.msra.gmra.mrb[16].mxu1 %vm689_vm2, %v1434_v58 }
 0x4af   : > { %v1309_v4 = vpop.xlane.xlu1 %1308 }
 0x4b0   : > { %v1343_v41 = vsub.f32 %v3036_v51, %v1309_v4 }
 0x4b1   : > { %v1312_v31 = vpop.xlane.xlu0 %1311 }
 0x4b2   : > { %v1344_v29 = vsub.f32 %v3040_v12, %v1312_v31  ;;  %v1365_v10 = vmul.f32 1.442695, %v1343_v41 }
 0x4b3   : > { %v1303_v39 = vpop.xlane.xlu1 %1302 }
 0x4b4   : > { %v1341_v20 = vsub.f32 %v3038_v8, %v1303_v39  ;;  %v1367_v50 = vmul.f32 1.442695, %v1344_v29  ;;  %2517 = vpow2.f32 %v1365_v10 }
 0x4b5   : > { %v1306_v49 = vpop.xlane.xlu0 %1305 }
 0x4b6   : > { %v1361_v18 = vmul.f32 1.442695, %v1341_v20  ;;  %v1342_v40 = vsub.f32 %v3044_v1, %v1306_v49 }
 0x4b8   : > { %2519 = vpow2.f32 %v1361_v18  ;;  %v1363_v13 = vmul.f32 1.442695, %v1342_v40 }
 0x4b9   : > { %2521 = vpow2.f32 %v1367_v50 }
 0x4ba   : > { %2523 = vpow2.f32 %v1363_v13 }
 0x4be   : > { %v2518_v43 = vpop.eup %2517 }
 0x4bf   : > { %v1403_v29 = vsel %vm689_vm2, %v2518_v43, 0.0 }
 0x4c2   : > { %v2520_v48 = vpop.eup %2519 }
 0x4c3   : > { %v2522_v51 = vpop.eup %2521  ;;  %v1321_v16 = vpop.xlane.xlu0 %1320  ;;  %v1397_v12 = vsel %vm689_vm2, %v2520_v48, 0.0 }
 0x4c4   : > { %v2524_v46 = vpop.eup %2523  ;;  %v1347_v61 = vsub.f32 %v3060_v22, %v1321_v16  ;;  %v1315_v8 = vpop.xlane.xlu1 %1314  ;;  %1398 = vadd.xlane.f32.xlu1 %v1397_v12  ;;  %v1436_v11 = vpack.c.bf16 %v2522_v51, %v2518_v43  ;;  %v1406_v22 = vsel %vm689_vm2, %v2522_v51, 0.0 }
 0x4c5   : > { %v1345_v58 = vsub.f32 %v3062_v53, %v1315_v8  ;;  %v1400_v1 = vsel %vm689_vm2, %v2524_v46, 0.0  ;;  %v1435_v7 = vpack.c.bf16 %v2524_v46, %v2520_v48 }
 0x4c6   : > { %1401 = vadd.xlane.f32.xlu0 %v1400_v1  ;;  %v1373_v4 = vmul.f32 1.442695, %v1347_v61 }
 0x4c7   : > { %v1369_v41 = vmul.f32 1.442695, %v1345_v58  ;;  %2364 = vmatprep.mubr.msk.bf16.mxu1 %vm689_vm2, %v1435_v7  ;;  %v1324_v31 = vpop.xlane.xlu0 %1323 }
 0x4c8   : > { %1404 = vadd.xlane.f32.xlu1 %v1403_v29  ;;  %2365 = vmatmul.mubr.msk.bf16.gmra.mrb[20].mxu1 %vm689_vm2, %v1436_v11  ;;  %v1348_v53 = vsub.f32 %v3064_v5, %v1324_v31 }
 0x4c9   : > { %2525 = vpow2.f32 %v1369_v41 }
 0x4ca   : > { %1407 = vadd.xlane.f32.xlu0 %v1406_v22  ;;  %2527 = vpow2.f32 %v1373_v4  ;;  %v1375_v49 = vmul.f32 1.442695, %v1348_v53 }
 0x4cb   : > { %v1318_v10 = vpop.xlane.xlu0 %1317 }
 0x4cc   : > { %v1346_v39 = vsub.f32 %v3068_v17, %v1318_v10  ;;  %v1327_v20 = vpop.xlane.xlu1 %1326  ;;  %v786_v10 = vsel %vm689_vm2, %v2890_v38, 0.0  ;;  %v798_v38 = vsel %vm689_vm2, %v2904_v62, 0.0  ;;  %v810_v62 = vsel %vm689_vm2, %v2937_v35, 0.0 }
 0x4cd   : > { %v1349_v50 = vsub.f32 %v3074_v30, %v1327_v20  ;;  %v822_v35 = vsel %vm689_vm2, %v2968_v59, 0.0  ;;  %v831_v59 = vsel %vm689_vm2, %v2975_v60, 0.0 }
 0x4ce   : > { %v1371_v18 = vmul.f32 1.442695, %v1346_v39 }
 0x4cf   : > { %v1377_v40 = vmul.f32 1.442695, %v1349_v50  ;;  %v1333_v13 = vpop.xlane.xlu0 %1332 }
 0x4d0   : > { %2529 = vpow2.f32 %v1371_v18  ;;  %v1351_v43 = vsub.f32 %v3076_v28, %v1333_v13  ;;  %v1533_v8 = vpop.permute.xlu1 %1532  ;;  %v792_v18 = vsel %vm689_vm2, %v2895_v45, 0.0  ;;  %v804_v45 = vsel %vm689_vm2, %v2912_v3, 0.0 }
 0x4d1   : > { %2531 = vpow2.f32 %v1377_v40  ;;  %v807_v3 = vsel %vm689_vm2, %v2908_v63, 0.0  ;;  %v825_v63 = vsel %vm689_vm2, %v2966_v55, 0.0 }
 0x4d2   : > { %2533 = vpow2.f32 %v1375_v49  ;;  %v1381_v48 = vmul.f32 1.442695, %v1351_v43 }
 0x4d3   : > { %v2526_v51 = vpop.eup %2525  ;;  %v1336_v5 = vpop.xlane.xlu0 %1335 }
 0x4d4   : > { %2535 = vpow2.f32 %v1381_v48  ;;  %v1409_v16 = vsel %vm689_vm2, %v2526_v51, 0.0  ;;  %v2528_v12 = vpop.eup %2527  ;;  %v1352_v17 = vsub.f32 %v3082_v6, %v1336_v5  ;;  %v1535_v29 = vpop.permute.xlu1 %1534  ;;  %v789_v48 = vsel %vm689_vm2, %v2888_v57, 0.0 }
 0x4d5   : > { %1410 = vadd.xlane.f32.xlu1 %v1409_v16  ;;  %v1415_v61 = vsel %vm689_vm2, %v2528_v12, 0.0  ;;  %v795_v5 = vsel %vm689_vm2, %v2897_v52, 0.0  ;;  %v2475_v16 = vld [vmem:[%s3338_s3 + $0x8] sm:$0xff]   ;;  %v801_v57 = vsel %vm689_vm2, %v2910_v2, 0.0  ;;  %v816_v52 = vsel %vm689_vm2, %v2941_v37, 0.0 }
 0x4d6   : > { %v1383_v58 = vmul.f32 1.442695, %v1352_v17  ;;  %2384 = vmatprep.subr.bf16.mxu1 %v2475_v16  ;;  %v828_v2 = vsel %vm689_vm2, %v2972_v56, 0.0  ;;  %v819_v37 = vsel %vm689_vm2, %v2933_v0, 0.0 }
 0x4d7   : > { %v1330_v30 = vpop.xlane.xlu0 %1329  ;;  %2385 = vmatpush3.bf16.msra.mxu1 %v2475_v16 }
 0x4d8   : > { %v1350_v46 = vsub.f32 %v3086_v54, %v1330_v30  ;;  %v1537_v39 = vpop.permute.xlu1 %1536 }
 0x4d9   : > { %1416 = vadd.xlane.f32.xlu1 %v1415_v61 }
 0x4da   : > { %v2530_v28 = vpop.eup %2529  ;;  %v1379_v1 = vmul.f32 1.442695, %v1350_v46 }
 0x4db   : > { %v2532_v7 = vpop.eup %2531  ;;  %v1531_v11 = vpop.permute.xlu0 %1530  ;;  %v1412_v4 = vsel %vm689_vm2, %v2530_v28, 0.0  ;;  %v1437_v41 = vpack.c.bf16 %v2530_v28, %v2526_v51 }
 0x4dc   : > { %v2534_v31 = vpop.eup %2533  ;;  %2537 = vpow2.f32 %v1379_v1  ;;  %1413 = vadd.xlane.f32.xlu0 %v1412_v4  ;;  %2368 = vmatprep.subr.bf16.mxu0 %v1531_v11  ;;  %v1421_v6 = vsel %vm689_vm2, %v2532_v7, 0.0 }
 0x4dd   : > { %1422 = vadd.xlane.f32.xlu1 %v1421_v6  ;;  %2369 = vmatpush3.bf16.msra.mxu0 %v1531_v11  ;;  %2539 = vpow2.f32 %v1383_v58  ;;  %v1418_v22 = vsel %vm689_vm2, %v2534_v31, 0.0  ;;  %v1438_v40 = vpack.c.bf16 %v2534_v31, %v2528_v12  ;;  %v813_v12 = vsel %vm689_vm2, %v2939_v36, 0.0  ;;  %v2476_v36 = vld [vmem:[%s3338_s3] sm:$0xff]  }
 0x4de   : > { %v2536_v54 = vpop.eup %2535  ;;  %2376 = vmatprep.mubr.msk.bf16.mxu0 %vm689_vm2, %v1437_v41  ;;  %2370 = vmatprep.subr.bf16.mxu0 %v1533_v8 }
 0x4df   : > { %v1427_v53 = vsel %vm689_vm2, %v2536_v54, 0.0  ;;  %2402 = vmatprep.subr.bf16.mxu1 %v2476_v36 }
 0x4e0   : > { %1419 = vadd.xlane.f32.xlu0 %v1418_v22 }
 0x4e1   : > { %1428 = vadd.xlane.f32.xlu1 %v1427_v53  ;;  %2371 = vmatpush3.bf16.msra.mxu0 %v1533_v8 }
 0x4e2   : > { %2372 = vmatprep.subr.bf16.mxu0 %v1535_v29 }
 0x4e5   : > { %787 = vadd.xlane.f32.xlu1 %v786_v10  ;;  %2373 = vmatpush3.bf16.msra.mxu0 %v1535_v29 }
 0x4e6   : > { %v2538_v20 = vpop.eup %2537  ;;  %2374 = vmatprep.subr.bf16.mxu0 %v1537_v39 }
 0x4e7   : > { %v1424_v50 = vsel %vm689_vm2, %v2538_v20, 0.0  ;;  %v2540_v49 = vpop.eup %2539  ;;  %v1439_v43 = vpack.c.bf16 %v2538_v20, %v2532_v7 }
 0x4e8   : > { %1425 = vadd.xlane.f32.xlu0 %v1424_v50  ;;  %v1430_v13 = vsel %vm689_vm2, %v2540_v49, 0.0  ;;  %v1440_v51 = vpack.c.bf16 %v2540_v49, %v2536_v54 }
 0x4e9   : > { %793 = vadd.xlane.f32.xlu1 %v792_v18  ;;  %2375 = vmatpush3.bf16.msra.mxu0 %v1537_v39 }
 0x4ec   : > { %1431 = vadd.xlane.f32.xlu0 %v1430_v13  ;;  %2377 = vmatmul.mubr.msk.bf16.vlgmr.msra.gmra.mrb[48].mxu0 %vm689_vm2, %v1438_v40 }
 0x4ed   : > { %799 = vadd.xlane.f32.xlu1 %v798_v38  ;;  %2380 = vmatprep.mubr.msk.bf16.mxu0 %vm689_vm2, %v1439_v43 }
 0x4f0   : > { %790 = vadd.xlane.f32.xlu0 %v789_v48 }
 0x4f1   : > { %805 = vadd.xlane.f32.xlu1 %v804_v45 }
 0x4f4   : > { %796 = vadd.xlane.f32.xlu0 %v795_v5  ;;  %2381 = vmatmul.mubr.msk.bf16.gmra.mrb[52].mxu0 %vm689_vm2, %v1440_v51 }
 0x4f5   : > { %811 = vadd.xlane.f32.xlu1 %v810_v62 }
 0x4f8   : > { %802 = vadd.xlane.f32.xlu0 %v801_v57 }
 0x4f9   : > { %817 = vadd.xlane.f32.xlu1 %v816_v52 }
 0x4fc   : > { %808 = vadd.xlane.f32.xlu0 %v807_v3 }
 0x4fd   : > { %823 = vadd.xlane.f32.xlu1 %v822_v35 }
 0x500   : > { %814 = vadd.xlane.f32.xlu0 %v813_v12 }
 0x501   : > { %829 = vadd.xlane.f32.xlu1 %v828_v2 }
 0x504   : > { %820 = vadd.xlane.f32.xlu0 %v819_v37 }
 0x508   : > { %826 = vadd.xlane.f32.xlu0 %v825_v63 }
 0x50c   : > { %832 = vadd.xlane.f32.xlu0 %v831_v59 }
 0x524   : > { %v1390_v30 = vpop.xlane.xlu0 %1389 }
 0x525   : > { %v1387_v17 = vpop.xlane.xlu1 %1386  ;;  %2541 = vrcp.f32 %v1390_v30 }
 0x529   : > { %v1393_v56 = vpop.xlane.xlu1 %1392  ;;  %v1396_v61 = vpop.xlane.xlu0 %1395 }
 0x52a   : > { %2543 = vrcp.f32 %v1393_v56 }
 0x52b   : > { %2545 = vrcp.f32 %v1396_v61 }
 0x52c   : > { %2547 = vrcp.f32 %v1387_v17 }
 0x52f   : > { %v2542_v11 = vpop.eup %2541 }
 0x534   : > { %v2544_v41 = vpop.eup %2543 }
 0x535   : > { %v2546_v54 = vpop.eup %2545 }
 0x536   : > { %v2548_v53 = vpop.eup %2547 }
 0x551   : > { %v1399_v46 = vpop.xlane.xlu1 %1398 }
 0x553   : > { %v1402_v8 = vpop.xlane.xlu0 %1401 }
 0x555   : > { %v3178_v0 = vpop.xlane.xlu1 %1404 }
 0x557   : > { %v3184_v60 = vpop.xlane.xlu0 %1407 }
 0x562   : > { %v3180_v28 = vpop.xlane.xlu1 %1410 }
 0x566   : > { %v3182_v55 = vpop.xlane.xlu1 %1416 }
 0x569   : > { %v3188_v1 = vpop.xlane.xlu0 %1413 }
 0x56a   : > { %v3186_v58 = vpop.xlane.xlu1 %1422 }
 0x56d   : > { %v3192_v31 = vpop.xlane.xlu0 %1419 }
 0x56e   : > { %v3190_v7 = vpop.xlane.xlu1 %1428 }
 0x570   : > { %v2362_v4 = vpop.f32.mrb[16].mxu1 }
 0x571   : > { %v1499_v6 = vpop.f32.mrb[17].mxu1  ;;  %v1637_v10 = vmul.f32 %v2544_v41, %v2362_v4 }
 0x572   : > { %v2363_v29 = vpop.f32.mrb[18].mxu1  ;;  %v788_v22 = vpop.xlane.xlu1 %787  ;;  %v1635_v50 = vmul.f32 %v2548_v53, %v1499_v6 }
 0x573   : > { %v1638_v39 = vmul.f32 %v2546_v54, %v2363_v29  ;;  %v1502_v20 = vpop.f32.mrb[19].mxu1  ;;  %2549 = vrcp.f32 %v788_v22 }
 0x574   : > { %v1636_v49 = vmul.f32 %v2542_v11, %v1502_v20 }
 0x575   : > { %v1652_v18 = vpack.c.bf16 %v1638_v39, %v1637_v10  ;;  %v3194_v40 = vpop.xlane.xlu0 %1425 }
 0x576   : > { %v1651_v13 = vpack.c.bf16 %v1636_v49, %v1635_v50  ;;  %v794_v43 = vpop.xlane.xlu1 %793 }
 0x578   : > { %2386 = vmatprep.mubr.msk.bf16.mxu1 %vm498_vm1, %v1651_v13 }
 0x579   : > { %2387 = vmatmul.mubr.msk.bf16.vlgmr.msra.gmra.mrb[24].mxu1 %vm498_vm1, %v1652_v18  ;;  %v3198_v38 = vpop.xlane.xlu0 %1431 }
 0x57a   : > { %v800_v48 = vpop.xlane.xlu1 %799  ;;  %2403 = vmatpush3.bf16.msra.mxu1 %v2476_v36 }
 0x57d   : > { %v791_v45 = vpop.xlane.xlu0 %790  ;;  %v2550_v57 = vpop.eup %2549 }
 0x57e   : > { %2551 = vrcp.f32 %v791_v45  ;;  %v806_v51 = vpop.xlane.xlu1 %805  ;;  %v3201_v12 = vmul.f32 %v2550_v57, %v2986_v23 }
 0x57f   : > { %2553 = vrcp.f32 %v794_v43 }
 0x581   : > { %v797_v5 = vpop.xlane.xlu0 %796 }
 0x582   : > { %2555 = vrcp.f32 %v797_v5  ;;  %v812_v62 = vpop.xlane.xlu1 %811 }
 0x583   : > { %2557 = vrcp.f32 %v800_v48 }
 0x585   : > { %v803_v16 = vpop.xlane.xlu0 %802 }
 0x586   : > { %2559 = vrcp.f32 %v803_v16  ;;  %v818_v3 = vpop.xlane.xlu1 %817 }
 0x587   : > { %2561 = vrcp.f32 %v806_v51 }
 0x588   : > { %v2552_v52 = vpop.eup %2551 }
 0x589   : > { %v809_v35 = vpop.xlane.xlu0 %808  ;;  %v3204_v2 = vmul.f32 %v2552_v52, %v2990_v26  ;;  %v2554_v37 = vpop.eup %2553 }
 0x58a   : > { %2563 = vrcp.f32 %v809_v35  ;;  %v3209_v36 = vmul.f32 %v2554_v37, %v2984_v21  ;;  %v824_v30 = vpop.xlane.xlu1 %823 }
 0x58b   : > { %v1052_v63 = vpack.c.bf16 %v3204_v2, %v3201_v12  ;;  %2565 = vrcp.f32 %v812_v62  ;;  %v2100_v12 = vld [vmem:[%s3339_s4] ss:$0 sm:$0xff] }
 0x58c   : > { %v2556_v59 = vpop.eup %2555  ;;  %2567 = vrcp.f32 %v1399_v46 }
 0x58d   : > { %v3212_v17 = vmul.f32 %v2556_v59, %v2988_v25  ;;  %v815_v56 = vpop.xlane.xlu0 %814  ;;  %v2558_v23 = vpop.eup %2557 }
 0x58e   : > { %2569 = vrcp.f32 %v815_v56  ;;  %v3218_v46 = vmul.f32 %v2558_v23, %v2994_v32  ;;  %v830_v41 = vpop.xlane.xlu1 %829 }
 0x58f   : > { %2571 = vrcp.f32 %v1402_v8  ;;  %v1053_v26 = vpack.c.bf16 %v3212_v17, %v3209_v36 }
 0x590   : > { %v2560_v61 = vpop.eup %2559  ;;  %2573 = vrcp.f32 %v818_v3 }
 0x591   : > { %2575 = vrcp.f32 %v3178_v0  ;;  %v821_v11 = vpop.xlane.xlu0 %820  ;;  %v3221_v21 = vmul.f32 %v2560_v61, %v2998_v14  ;;  %v2562_v25 = vpop.eup %2561 }
 0x592   : > { %2577 = vrcp.f32 %v821_v11  ;;  %v3227_v0 = vmul.f32 %v2562_v25, %v2992_v27 }
 0x593   : > { %2579 = vrcp.f32 %v3184_v60  ;;  %v1054_v8 = vpack.c.bf16 %v3221_v21, %v3218_v46 }
 0x594   : > { %v2564_v4 = vpop.eup %2563  ;;  %2581 = vrcp.f32 %v824_v30 }
 0x595   : > { %v827_v6 = vpop.xlane.xlu0 %826  ;;  %v3230_v32 = vmul.f32 %v2564_v4, %v2996_v33  ;;  %v2566_v54 = vpop.eup %2565 }
 0x596   : > { %2583 = vrcp.f32 %v827_v6  ;;  %v2568_v14 = vpop.eup %2567  ;;  %v3235_v10 = vmul.f32 %v2566_v54, %v3008_v19 }
 0x597   : > { %v1055_v29 = vpack.c.bf16 %v3230_v32, %v3227_v0  ;;  %2585 = vrcp.f32 %v830_v41 }
 0x598   : > { %v2570_v60 = vpop.eup %2569 }
 0x599   : > { %v2572_v22 = vpop.eup %2571  ;;  %v833_v53 = vpop.xlane.xlu0 %832  ;;  %v3238_v39 = vmul.f32 %v2570_v60, %v3014_v44 }
 0x59a   : > { %v2574_v27 = vpop.eup %2573  ;;  %2587 = vrcp.f32 %v833_v53 }
 0x59b   : > { %v2576_v33 = vpop.eup %2575  ;;  %v2366_v20 = vpop.f32.mrb[20].mxu1  ;;  %v1056_v50 = vpack.c.bf16 %v3238_v39, %v3235_v10  ;;  %v3243_v48 = vmul.f32 %v2574_v27, %v3006_v9  ;;  %2589 = vrcp.f32 %v3180_v28 }
 0x59c   : > { %v2578_v49 = vpop.eup %2577  ;;  %v1515_v18 = vpop.f32.mrb[21].mxu1  ;;  %v1641_v44 = vmul.f32 %v2576_v33, %v2366_v20  ;;  %2591 = vrcp.f32 %v3182_v55 }
 0x59d   : > { %v2580_v13 = vpop.eup %2579  ;;  %v2367_v43 = vpop.f32.mrb[22].mxu1  ;;  %v3246_v19 = vmul.f32 %v2578_v49, %v3010_v42  ;;  %v1639_v62 = vmul.f32 %v2568_v14, %v1515_v18  ;;  %2593 = vrcp.f32 %v3192_v31 }
 0x59e   : > { %v2582_v45 = vpop.eup %2581  ;;  %v1642_v51 = vmul.f32 %v2580_v13, %v2367_v43  ;;  %v1518_v5 = vpop.f32.mrb[23].mxu1  ;;  %2595 = vrcp.f32 %v3188_v1 }
 0x59f   : > { %v1640_v16 = vmul.f32 %v2572_v22, %v1518_v5  ;;  %v1057_v57 = vpack.c.bf16 %v3246_v19, %v3243_v48  ;;  %v1048_v37 = vmul.f32 %v2582_v45, %v3054_v47  ;;  %2597 = vrcp.f32 %v3186_v58 }
 0x5a0   : > { %v2584_v52 = vpop.eup %2583  ;;  %v1654_v3 = vpack.c.bf16 %v1642_v51, %v1641_v44  ;;  %2599 = vrcp.f32 %v3190_v7 }
 0x5a1   : > { %v1653_v35 = vpack.c.bf16 %v1640_v16, %v1639_v62  ;;  %v1049_v9 = vmul.f32 %v2584_v52, %v3058_v24  ;;  %v2586_v59 = vpop.eup %2585  ;;  %2601 = vrcp.f32 %v3198_v38 }
 0x5a2   : > { %v1050_v23 = vmul.f32 %v2586_v59, %v3052_v15  ;;  %2603 = vrcp.f32 %v3194_v40 }
 0x5a3   : > { %2390 = vmatprep.mubr.msk.bf16.mxu1 %vm498_vm1, %v1653_v35  ;;  %v1058_v42 = vpack.c.bf16 %v1049_v9, %v1048_v37 }
 0x5a4   : > { %v2588_v56 = vpop.eup %2587  ;;  %2391 = vmatmul.mubr.msk.bf16.gmra.mrb[28].mxu1 %vm498_vm1, %v1654_v3 }
 0x5a5   : > { %v1051_v30 = vmul.f32 %v2588_v56, %v3056_v34  ;;  %v2590_v47 = vpop.eup %2589 }
 0x5a6   : > { %v2592_v15 = vpop.eup %2591 }
 0x5a7   : > { %v1059_v61 = vpack.c.bf16 %v1051_v30, %v1050_v23  ;;  %v2594_v11 = vpop.eup %2593 }
 0x5a8   : > { %v2596_v25 = vpop.eup %2595 }
 0x5a9   : > { %v2598_v54 = vpop.eup %2597 }
 0x5aa   : > { %v2600_v38 = vpop.eup %2599 }
 0x5ab   : > { %v2602_v40 = vpop.eup %2601 }
 0x5ac   : > { %v2604_v22 = vpop.eup %2603 }
 0x5bf   : > { %v2378_v24 = vpop.f32.mrb[48].mxu0 }
 0x5c0   : > { %v1588_v34 = vpop.f32.mrb[49].mxu0  ;;  %v1645_v55 = vmul.f32 %v2592_v15, %v2378_v24 }
 0x5c1   : > { %v2379_v28 = vpop.f32.mrb[50].mxu0  ;;  %v1643_v41 = vmul.f32 %v2590_v47, %v1588_v34 }
 0x5c2   : > { %v1646_v4 = vmul.f32 %v2594_v11, %v2379_v28  ;;  %v1591_v31 = vpop.f32.mrb[51].mxu0 }
 0x5c3   : > { %v1644_v1 = vmul.f32 %v2596_v25, %v1591_v31 }
 0x5c4   : > { %v1656_v6 = vpack.c.bf16 %v1646_v4, %v1645_v55 }
 0x5c5   : > { %v1655_v58 = vpack.c.bf16 %v1644_v1, %v1643_v41 }
 0x5c7   : > { %v2382_v7 = vpop.f32.mrb[52].mxu0  ;;  %2394 = vmatprep.mubr.msk.bf16.mxu1 %vm498_vm1, %v1655_v58 }
 0x5c8   : > { %v1604_v14 = vpop.f32.mrb[53].mxu0  ;;  %2395 = vmatmul.mubr.msk.bf16.gmra.mrb[32].mxu1 %vm498_vm1, %v1656_v6  ;;  %v1649_v53 = vmul.f32 %v2600_v38, %v2382_v7 }
 0x5c9   : > { %v2383_v60 = vpop.f32.mrb[54].mxu0  ;;  %v1647_v20 = vmul.f32 %v2598_v54, %v1604_v14 }
 0x5ca   : > { %v1650_v27 = vmul.f32 %v2602_v40, %v2383_v60  ;;  %v1607_v33 = vpop.f32.mrb[55].mxu0 }
 0x5cb   : > { %v1648_v49 = vmul.f32 %v2604_v22, %v1607_v33 }
 0x5cc   : > { %v1658_v18 = vpack.c.bf16 %v1650_v27, %v1649_v53 }
 0x5cd   : > { %v1657_v13 = vpack.c.bf16 %v1648_v49, %v1647_v20 }
 0x5cf   : > { %2398 = vmatprep.mubr.msk.bf16.mxu1 %vm498_vm1, %v1657_v13 }
 0x5d0   : > { %2399 = vmatmul.mubr.msk.bf16.gmra.mrb[36].mxu1 %vm498_vm1, %v1658_v18 }
 0x5d1   : > { %2404 = vmatprep.mubr.msk.bf16.mxu1 %vm498_vm1, %v1052_v63 }
 0x5d8   : > { %2405 = vmatmul.mubr.msk.bf16.vlgmr.msra.gmra.mrb[24].mxu1 %vm498_vm1, %v1053_v26 }
 0x5d9   : > { %2408 = vmatprep.mubr.msk.bf16.mxu1 %vm498_vm1, %v1054_v8 }
 0x5e0   : > { %2409 = vmatmul.mubr.msk.bf16.gmra.mrb[28].mxu1 %vm498_vm1, %v1055_v29 }
 0x5e1   : > { %2412 = vmatprep.mubr.msk.bf16.mxu1 %vm498_vm1, %v1056_v50 }
 0x5e8   : > { %2413 = vmatmul.mubr.msk.bf16.gmra.mrb[32].mxu1 %vm498_vm1, %v1057_v57 }
 0x5e9   : > { %2416 = vmatprep.mubr.msk.bf16.mxu1 %vm498_vm1, %v1058_v42 }
 0x5f0   : > { %2417 = vmatmul.mubr.msk.bf16.gmra.mrb[36].mxu1 %vm498_vm1, %v1059_v61 }
 0x6ab   : > { %v2406_v2 = vpop.f32.mrb[24].mxu1 }
 0x6ac   : > { %v1924_v63 = vadd.f32 %v2406_v2, %v2100_v12  ;;  %v1852_v36 = vpop.f32.mrb[25].mxu1 }
 0x6ad   : > { %v1922_v17 = vadd.f32 %v2100_v12, %v1852_v36  ;;  %v2407_v26 = vpop.f32.mrb[26].mxu1 }
 0x6ae   : > { %1940 = vst.msk [vmem:[%s3298_s18 + $0x10] sm:$0xff] %vm340_vm0, %v1924_v63  ;;  %v1925_v46 = vadd.f32 %v2407_v26, %v2100_v12  ;;  %v1855_v21 = vpop.f32.mrb[27].mxu1 }
 0x6af   : > { %1938 = vst.msk [vmem:[%s3298_s18] sm:$0xff] %vm340_vm0, %v1922_v17  ;;  %v1923_v8 = vadd.f32 %v2100_v12, %v1855_v21 }
 0x6b0   : > { %1941 = vst.msk [vmem:[%s3298_s18 + $0x18] sm:$0xff] %vm340_vm0, %v1925_v46 }
 0x6b1   : > { %1939 = vst.msk [vmem:[%s3298_s18 + $0x8] sm:$0xff] %vm340_vm0, %v1923_v8 }
 0x6b3   : > { %v2410_v0 = vpop.f32.mrb[28].mxu1 }
 0x6b4   : > { %v1928_v32 = vadd.f32 %v2410_v0, %v2100_v12  ;;  %v1868_v29 = vpop.f32.mrb[29].mxu1 }
 0x6b5   : > { %v1926_v10 = vadd.f32 %v2100_v12, %v1868_v29  ;;  %v2411_v39 = vpop.f32.mrb[30].mxu1 }
 0x6b6   : > { %1944 = vst.msk [vmem:[%s3298_s18 + $0x30] sm:$0xff] %vm340_vm0, %v1928_v32  ;;  %v1929_v50 = vadd.f32 %v2411_v39, %v2100_v12  ;;  %v1871_v43 = vpop.f32.mrb[31].mxu1 }
 0x6b7   : > { %1942 = vst.msk [vmem:[%s3298_s18 + $0x20] sm:$0xff] %vm340_vm0, %v1926_v10  ;;  %v1927_v48 = vadd.f32 %v2100_v12, %v1871_v43 }
 0x6b8   : > { %1945 = vst.msk [vmem:[%s3298_s18 + $0x38] sm:$0xff] %vm340_vm0, %v1929_v50 }
 0x6b9   : > { %1943 = vst.msk [vmem:[%s3298_s18 + $0x28] sm:$0xff] %vm340_vm0, %v1927_v48 }
 0x6bb   : > { %v2414_v19 = vpop.f32.mrb[32].mxu1 }
 0x6bc   : > { %v1932_v45 = vadd.f32 %v2414_v19, %v2100_v12  ;;  %v1884_v44 = vpop.f32.mrb[33].mxu1 }
 0x6bd   : > { %v1930_v51 = vadd.f32 %v2100_v12, %v1884_v44  ;;  %v2415_v5 = vpop.f32.mrb[34].mxu1 }
 0x6be   : > { %1948 = vst.msk [vmem:[%s3298_s18 + $0x50] sm:$0xff] %vm340_vm0, %v1932_v45  ;;  %v1933_v62 = vadd.f32 %v2415_v5, %v2100_v12  ;;  %v1887_v16 = vpop.f32.mrb[35].mxu1 }
 0x6bf   : > { %1946 = vst.msk [vmem:[%s3298_s18 + $0x40] sm:$0xff] %vm340_vm0, %v1930_v51  ;;  %v1931_v57 = vadd.f32 %v2100_v12, %v1887_v16 }
 0x6c0   : > { %1949 = vst.msk [vmem:[%s3298_s18 + $0x58] sm:$0xff] %vm340_vm0, %v1933_v62 }
 0x6c1   : > { %1947 = vst.msk [vmem:[%s3298_s18 + $0x48] sm:$0xff] %vm340_vm0, %v1931_v57 }
 0x6c3   : > { %v2418_v52 = vpop.f32.mrb[36].mxu1 }
 0x6c4   : > { %v1936_v3 = vadd.f32 %v2418_v52, %v2100_v12  ;;  %v1900_v35 = vpop.f32.mrb[37].mxu1 }
 0x6c5   : > { %v1934_v37 = vadd.f32 %v2100_v12, %v1900_v35  ;;  %v2419_v9 = vpop.f32.mrb[38].mxu1 }
 0x6c6   : > { %1952 = vst.msk [vmem:[%s3298_s18 + $0x70] sm:$0xff] %vm340_vm0, %v1936_v3  ;;  %v1937_v59 = vadd.f32 %v2419_v9, %v2100_v12  ;;  %v1903_v42 = vpop.f32.mrb[39].mxu1 }
 0x6c7   : > { %1950 = vst.msk [vmem:[%s3298_s18 + $0x60] sm:$0xff] %vm340_vm0, %v1934_v37  ;;  %v1935_v56 = vadd.f32 %v2100_v12, %v1903_v42 }
 0x6c8   : > { %1953 = vst.msk [vmem:[%s3298_s18 + $0x78] sm:$0xff] %vm340_vm0, %v1937_v59 }
 0x6c9   : > { %1951 = vst.msk [vmem:[%s3298_s18 + $0x68] sm:$0xff] %vm340_vm0, %v1935_v56 }
 0x6ca PF: > { %s16_s21 = sadd.s32 1, %s2611_s21  }
 0x6cb   : > { %p13_p4 = scmp.ge.s32.totalorder %s16_s21, 5  }
 0x6cd   :  { %15 = sbr.rel (!%p13_p4) target bundleno = 1 (0x1), region = 75 }

</bundles_post_ra>
